<compile_context>
chip_gen: v7x
topology: tpu7x:2x2x1
jax: 0.10.0
libtpu: 0.0.40
codegen_flags: <defaults>
</compile_context>

<pallas_src>
import jax
import jax.numpy as jnp
from jax.experimental import pallas as pl
from jax.experimental.pallas import tpu as pltpu

# ----------------------------- hyperparameters ------------------------------
VOCAB = 32     # vocab size of the synthetic text model
B = 2          # batch per text
S = 8          # sequence length
H = 32         # hidden size
NH = 2         # attention heads
HD = H // NH   # head dim
FFN = 64       # FFN intermediate size
LAT = 16       # latent dim of text2{structure,functional}_latent_model

TB = 2 * B              # both texts stacked along batch -> 4 sequences
NROWS = TB * S          # 32 token rows processed in one kernel step
LANE = 128              # lane width for padded / aligned slabs
WMAT_COLS = 4 * LANE    # [wqkv | wo | w1 | wp], each block 128-aligned
BVEC_ROWS = 16          # bias slab rows (9 used, zero-padded)
BVEC_COLS = 3 * H       # widest bias row (fused qkv bias = 96)
WLAT_ROWS = 40          # latent head slab: rows 0..H-1 = W, row H = bias, pad


# --------------------------------- kernel -----------------------------------
def _text_sf_kernel(ids_ref, mask_ref, tokpos_ref, wmat_ref, w2_ref, bvec_ref,
                    wlat_ref, out_ref):
    f32 = jnp.float32

    # ---- embedding: one_hot(ids) @ tok_emb on the MXU + pre-tiled positions ----
    ids = ids_ref[...]                                             # (NROWS, 1) int32
    iota = jax.lax.broadcasted_iota(jnp.int32, (NROWS, VOCAB), 1)
    onehot = (iota == ids).astype(f32)                             # (NROWS, VOCAB)
    tok_emb = tokpos_ref[0:VOCAB, :]                               # (VOCAB, H)
    pos = tokpos_ref[VOCAB:VOCAB + NROWS, :]                       # (NROWS, H)
    xf = jnp.dot(onehot, tok_emb, preferred_element_type=f32) + pos  # (NROWS, H)

    # ---- 128-aligned static slices of the packed weight slab ----
    wqkv = wmat_ref[:, 0:3 * H]                 # (H, 3H)  (scale folded into wq cols)
    wo = wmat_ref[:, LANE:LANE + H]             # (H, H)
    w1 = wmat_ref[:, 2 * LANE:2 * LANE + FFN]   # (H, FFN)
    wp = wmat_ref[:, 3 * LANE:3 * LANE + H]     # (H, H)

    # ---- sublane-packed biases: one bias per row ----
    bqkv = bvec_ref[0:1, :]                                        # (1, 3H)
    bo = bvec_ref[1:2, 0:H]
    g1 = bvec_ref[2:3, 0:H]
    be1 = bvec_ref[3:4, 0:H]
    b1 = bvec_ref[4:5, 0:FFN]
    b2 = bvec_ref[5:6, 0:H]
    g2 = bvec_ref[6:7, 0:H]
    be2 = bvec_ref[7:8, 0:H]
    bp = bvec_ref[8:9, 0:H]

    # ---- fused QKV projection: one (NROWS, H) @ (H, 3H) MXU push ----
    qkv = jnp.dot(xf, wqkv, preferred_element_type=f32) + bqkv     # (NROWS, 3H)
    q = qkv[:, 0:H].reshape(TB, S, H)
    k = qkv[:, H:2 * H].reshape(TB, S, H)
    v = qkv[:, 2 * H:3 * H].reshape(TB, S, H)

    mask = mask_ref[...]                                           # (TB, S)
    mask_bias = ((mask - 1.0) * 1e4)[:, None, :]                   # (TB, 1, S)

    # ---- attention: per-head softmax, accumulate through Wo row blocks ----
    attn = None
    for h in range(NH):                        # NH = 2, unrolled at trace time
        sl = slice(h * HD, (h + 1) * HD)
        qh, kh, vh = q[:, :, sl], k[:, :, sl], v[:, :, sl]         # (TB, S, HD)
        s = jnp.einsum('bqd,bkd->bqk', qh, kh,
                       preferred_element_type=f32) + mask_bias     # (TB, S, S)
        s = s - jnp.max(s, axis=-1, keepdims=True)
        p = jnp.exp(s)
        p = p / jnp.sum(p, axis=-1, keepdims=True)
        ctx_h = jnp.einsum('bqk,bkd->bqd', p, vh,
                           preferred_element_type=f32)             # (TB, S, HD)
        part = jnp.dot(ctx_h.reshape(NROWS, HD), wo[sl, :],
                       preferred_element_type=f32)                 # (NROWS, H)
        attn = part if attn is None else attn + part
    attn_out = attn + bo

    def layernorm(t, g, b):
        mu = jnp.mean(t, axis=-1, keepdims=True)
        var = jnp.mean((t - mu) ** 2, axis=-1, keepdims=True)
        return (t - mu) * jax.lax.rsqrt(var + 1e-12) * g + b

    x1 = layernorm(xf + attn_out, g1, be1)                         # (NROWS, H)

    # ---- feed forward ----
    # TODO(synk): tanh-approx GELU; exact erf GELU (HF BERT default) differs slightly.
    h1 = jax.nn.gelu(jnp.dot(x1, w1, preferred_element_type=f32) + b1,
                     approximate=True)                             # (NROWS, FFN)
    x2 = layernorm(x1 + jnp.dot(h1, w2_ref[...], preferred_element_type=f32) + b2,
                   g2, be2)                                        # (NROWS, H)

    # ---- BERT pooler: first-token hidden state, dense + tanh ----
    cls = x2.reshape(TB, S, H)[:, 0, :]                            # (TB, H)
    pooled = jnp.tanh(jnp.dot(cls, wp, preferred_element_type=f32) + bp)

    # ---- per-text latent heads (128-lane padded => lane-dense full store) ----
    wl_s = wlat_ref[0]                                             # (WLAT_ROWS, 128)
    wl_f = wlat_ref[1]
    lat_s = jnp.dot(pooled[0:B, :], wl_s[0:H, :],
                    preferred_element_type=f32) + wl_s[H:H + 1, :]  # (B, 128)
    lat_f = jnp.dot(pooled[B:TB, :], wl_f[0:H, :],
                    preferred_element_type=f32) + wl_f[H:H + 1, :]  # (B, 128)
    out_ref[...] = jnp.concatenate([lat_s, lat_f], axis=0).astype(out_ref.dtype)


# --------------------- one-time parameter packing (host) ---------------------
def pack_params(params):
    """Packs raw params into aligned slabs. Call ONCE, outside the forward."""
    scale = 1.0 / (HD ** 0.5)

    def pad_cols(w, width):
        return jnp.pad(w, ((0, 0), (0, width - w.shape[1])))

    # token embedding table stacked over pre-tiled positional embeddings
    tokpos = jnp.concatenate(
        [params['tok_emb'], jnp.tile(params['pos_emb'], (TB, 1))], axis=0)   # (VOCAB+NROWS, H)

    # attention scale folded into Wq / bq at pack time
    wqkv = jnp.concatenate([params['wq'] * scale, params['wk'], params['wv']], axis=1)
    wmat = jnp.concatenate(
        [pad_cols(wqkv, LANE), pad_cols(params['wo'], LANE),
         pad_cols(params['w1'], LANE), pad_cols(params['wp'], LANE)], axis=1)  # (H, 512)

    bqkv = jnp.concatenate([params['bq'] * scale, params['bk'], params['bv']], axis=1)
    rows = [bqkv, params['bo'], params['ln1_g'], params['ln1_b'], params['b1'],
            params['b2'], params['ln2_g'], params['ln2_b'], params['bp']]
    bvec = jnp.concatenate(
        [pad_cols(r, BVEC_COLS) for r in rows]
        + [jnp.zeros((BVEC_ROWS - len(rows), BVEC_COLS), jnp.float32)], axis=0)  # (16, 96)

    def head(w, b):
        return jnp.concatenate(
            [pad_cols(w, LANE), pad_cols(b, LANE),
             jnp.zeros((WLAT_ROWS - H - 1, LANE), jnp.float32)], axis=0)      # (40, 128)

    wlat = jnp.stack([head(params['wl_struct'], params['bl_struct']),
                      head(params['wl_func'], params['bl_func'])], axis=0)    # (2, 40, 128)

    return dict(tokpos=tokpos, wmat=wmat, w2=params['w2'], bvec=bvec, wlat=wlat)


# -------------------------------- wrapper ------------------------------------
@jax.jit
def text_model_sf_forward(structure_ids, structure_mask,
                          functional_ids, functional_mask, packed):
    """Mirrors TextModel_SF.forward: shared text encoder, separate latent heads."""
    # TODO(synk): the PyTorch except-branch (sklearn .fit_transform fallback on
    # CPU) is host-side control flow with no Pallas equivalent; only the
    # nn.Linear latent-model path is implemented.

    ids = jnp.concatenate([structure_ids.reshape(-1),
                           functional_ids.reshape(-1)], axis=0)
    ids = ids.reshape(NROWS, 1).astype(jnp.int32)                              # (32, 1)
    mask = jnp.concatenate([structure_mask, functional_mask],
                           axis=0).astype(jnp.float32)                         # (TB, S)

    out = pl.pallas_call(
        _text_sf_kernel,
        out_shape=jax.ShapeDtypeStruct((TB, LANE), jnp.float32),
        grid_spec=pltpu.PrefetchScalarGridSpec(
            num_scalar_prefetch=0,
            grid=(1,),                                         # single step: both texts together
            in_specs=[
                pl.BlockSpec((NROWS, 1), lambda i: (0, 0)),             # token ids
                pl.BlockSpec((TB, S), lambda i: (0, 0)),                # attention mask
                pl.BlockSpec((VOCAB + NROWS, H), lambda i: (0, 0)),     # tok_emb | tiled pos
                pl.BlockSpec((H, WMAT_COLS), lambda i: (0, 0)),         # packed matrices
                pl.BlockSpec((FFN, H), lambda i: (0, 0)),               # w2
                pl.BlockSpec((BVEC_ROWS, BVEC_COLS), lambda i: (0, 0)),  # packed biases
                pl.BlockSpec((2, WLAT_ROWS, LANE), lambda i: (0, 0, 0)),  # latent heads (W|b)
            ],
            out_specs=pl.BlockSpec((TB, LANE), lambda i: (0, 0)),
        ),
        compiler_params=pltpu.CompilerParams(
            dimension_semantics=("arbitrary",)),
    )(ids, mask, packed['tokpos'], packed['wmat'], packed['w2'],
      packed['bvec'], packed['wlat'])

    structure_repr = out[0:B, 0:LAT]
    functional_repr = out[B:TB, 0:LAT]
    return structure_repr, functional_repr


# ----------------------- deterministic parameter init ------------------------
def make_params(key):
    ks = jax.random.split(key, 16)

    def w(k, shape, scale=0.05):
        return (scale * jax.random.normal(k, shape)).astype(jnp.float32)

    zeros = lambda shape: jnp.zeros(shape, jnp.float32)
    ones = lambda shape: jnp.ones(shape, jnp.float32)

    return dict(
        tok_emb=w(ks[0], (VOCAB, H)),
        pos_emb=w(ks[1], (S, H)),
        wq=w(ks[2], (H, H)), bq=zeros((1, H)),
        wk=w(ks[3], (H, H)), bk=zeros((1, H)),
        wv=w(ks[4], (H, H)), bv=zeros((1, H)),
        wo=w(ks[5], (H, H)), bo=zeros((1, H)),
        ln1_g=ones((1, H)), ln1_b=zeros((1, H)),
        w1=w(ks[6], (H, FFN)), b1=zeros((1, FFN)),
        w2=w(ks[7], (FFN, H)), b2=zeros((1, H)),
        ln2_g=ones((1, H)), ln2_b=zeros((1, H)),
        wp=w(ks[8], (H, H)), bp=zeros((1, H)),
        wl_struct=w(ks[9], (H, LAT)), bl_struct=w(ks[10], (1, LAT), 0.01),
        wl_func=w(ks[11], (H, LAT)), bl_func=w(ks[12], (1, LAT), 0.01),
    )


# ----------------------------------- main ------------------------------------
if __name__ == "__main__":
    key = jax.random.PRNGKey(0)
    k_params, k_s_ids, k_f_ids = jax.random.split(key, 3)

    params = make_params(k_params)
    packed = pack_params(params)          # one-time slab packing (not per-call)

    structure_text_input_ids = jax.random.randint(k_s_ids, (B, S), 0, VOCAB, jnp.int32)
    functional_text_input_ids = jax.random.randint(k_f_ids, (B, S), 0, VOCAB, jnp.int32)
    structure_text_attention_mask = jnp.array(
        [[1, 1, 1, 1, 1, 1, 1, 1],
         [1, 1, 1, 1, 1, 1, 0, 0]], dtype=jnp.int32)
    functional_text_attention_mask = jnp.array(
        [[1, 1, 1, 1, 1, 0, 0, 0],
         [1, 1, 1, 1, 1, 1, 1, 1]], dtype=jnp.int32)

    structure_repr, functional_repr = text_model_sf_forward(
        structure_text_input_ids, structure_text_attention_mask,
        functional_text_input_ids, functional_text_attention_mask,
        packed)

    structure_repr = jax.block_until_ready(structure_repr)
    functional_repr = jax.block_until_ready(functional_repr)

    assert structure_repr.shape == (B, LAT) and functional_repr.shape == (B, LAT)
    assert bool(jnp.all(jnp.isfinite(structure_repr)))
    assert bool(jnp.all(jnp.isfinite(functional_repr)))
    print("KERNEL_OK")
</pallas_src>

<mosaic_0001>
module attributes {stable_mosaic.version = 11 : i64} {
  func.func @_text_sf_kernel(%arg0: i32, %arg1: memref<32x1xi32, #tpu.memory_space<vmem>>, %arg2: memref<4x8xf32, #tpu.memory_space<vmem>>, %arg3: memref<64x32xf32, #tpu.memory_space<vmem>>, %arg4: memref<32x512xf32, #tpu.memory_space<vmem>>, %arg5: memref<64x32xf32, #tpu.memory_space<vmem>>, %arg6: memref<16x96xf32, #tpu.memory_space<vmem>>, %arg7: memref<2x40x128xf32, #tpu.memory_space<vmem>>, %arg8: memref<4x128xf32, #tpu.memory_space<vmem>>) attributes {dimension_semantics = [#tpu.dimension_semantics<arbitrary>], iteration_bounds = array<i64: 1>, scalar_prefetch = 0 : i64, scratch_operands = 0 : i64, tpu.core_type = #tpu.core_type<tc>, window_params = [{pipeline_mode = #tpu.pipeline_mode<synchronous>, transform_indices = @transform_0, window_bounds = array<i64: 32, 1>}, {pipeline_mode = #tpu.pipeline_mode<synchronous>, transform_indices = @transform_1, window_bounds = array<i64: 4, 8>}, {pipeline_mode = #tpu.pipeline_mode<synchronous>, transform_indices = @transform_2, window_bounds = array<i64: 64, 32>}, {pipeline_mode = #tpu.pipeline_mode<synchronous>, transform_indices = @transform_3, window_bounds = array<i64: 32, 512>}, {pipeline_mode = #tpu.pipeline_mode<synchronous>, transform_indices = @transform_4, window_bounds = array<i64: 64, 32>}, {pipeline_mode = #tpu.pipeline_mode<synchronous>, transform_indices = @transform_5, window_bounds = array<i64: 16, 96>}, {pipeline_mode = #tpu.pipeline_mode<synchronous>, transform_indices = @transform_6, window_bounds = array<i64: 2, 40, 128>}, {pipeline_mode = #tpu.pipeline_mode<synchronous>, transform_indices = @transform_7, window_bounds = array<i64: 4, 128>}]} {
    %c0 = arith.constant 0 : index
    %c0_0 = arith.constant 0 : index
    %0 = vector.load %arg1[%c0, %c0_0] : memref<32x1xi32, #tpu.memory_space<vmem>>, vector<32x1xi32>
    %1 = tpu.iota {dimensions = array<i32: 1>} : vector<32x32xi32>
    %2 = vector.broadcast %0 : vector<32x1xi32> to vector<32x32xi32>
    %3 = arith.cmpi eq, %1, %2 : vector<32x32xi32>
    %4 = arith.extui %3 : vector<32x32xi1> to vector<32x32xi32>
    %5 = arith.sitofp %4 : vector<32x32xi32> to vector<32x32xf32>
    %c0_1 = arith.constant 0 : index
    %c0_2 = arith.constant 0 : index
    %6 = vector.load %arg3[%c0_1, %c0_2] : memref<64x32xf32, #tpu.memory_space<vmem>>, vector<32x32xf32>
    %c32 = arith.constant 32 : index
    %c0_3 = arith.constant 0 : index
    %7 = vector.load %arg3[%c32, %c0_3] : memref<64x32xf32, #tpu.memory_space<vmem>>, vector<32x32xf32>
    %cst = arith.constant dense<0.000000e+00> : vector<32x32xf32>
    %8 = tpu.matmul %5, %6, %cst {dimension_numbers = #tpu.dot_dimension_numbers<[1], [0], [0], [1], [0, 0, 1, 1], [], []>} : vector<32x32xf32>, vector<32x32xf32>, vector<32x32xf32> -> vector<32x32xf32>
    %9 = arith.addf %8, %7 : vector<32x32xf32>
    %c0_4 = arith.constant 0 : index
    %c0_5 = arith.constant 0 : index
    %10 = vector.load %arg4[%c0_4, %c0_5] : memref<32x512xf32, #tpu.memory_space<vmem>>, vector<32x96xf32>
    %c0_6 = arith.constant 0 : index
    %c128 = arith.constant 128 : index
    %11 = vector.load %arg4[%c0_6, %c128] : memref<32x512xf32, #tpu.memory_space<vmem>>, vector<32x32xf32>
    %c0_7 = arith.constant 0 : index
    %c256 = arith.constant 256 : index
    %12 = vector.load %arg4[%c0_7, %c256] : memref<32x512xf32, #tpu.memory_space<vmem>>, vector<32x64xf32>
    %c0_8 = arith.constant 0 : index
    %c384 = arith.constant 384 : index
    %13 = vector.load %arg4[%c0_8, %c384] : memref<32x512xf32, #tpu.memory_space<vmem>>, vector<32x32xf32>
    %c0_9 = arith.constant 0 : index
    %c0_10 = arith.constant 0 : index
    %14 = vector.load %arg6[%c0_9, %c0_10] : memref<16x96xf32, #tpu.memory_space<vmem>>, vector<1x96xf32>
    %c1 = arith.constant 1 : index
    %c0_11 = arith.constant 0 : index
    %15 = vector.load %arg6[%c1, %c0_11] : memref<16x96xf32, #tpu.memory_space<vmem>>, vector<1x32xf32>
    %c2 = arith.constant 2 : index
    %c0_12 = arith.constant 0 : index
    %16 = vector.load %arg6[%c2, %c0_12] : memref<16x96xf32, #tpu.memory_space<vmem>>, vector<1x32xf32>
    %c3 = arith.constant 3 : index
    %c0_13 = arith.constant 0 : index
    %17 = vector.load %arg6[%c3, %c0_13] : memref<16x96xf32, #tpu.memory_space<vmem>>, vector<1x32xf32>
    %c4 = arith.constant 4 : index
    %c0_14 = arith.constant 0 : index
    %18 = vector.load %arg6[%c4, %c0_14] : memref<16x96xf32, #tpu.memory_space<vmem>>, vector<1x64xf32>
    %c5 = arith.constant 5 : index
    %c0_15 = arith.constant 0 : index
    %19 = vector.load %arg6[%c5, %c0_15] : memref<16x96xf32, #tpu.memory_space<vmem>>, vector<1x32xf32>
    %c6 = arith.constant 6 : index
    %c0_16 = arith.constant 0 : index
    %20 = vector.load %arg6[%c6, %c0_16] : memref<16x96xf32, #tpu.memory_space<vmem>>, vector<1x32xf32>
    %c7 = arith.constant 7 : index
    %c0_17 = arith.constant 0 : index
    %21 = vector.load %arg6[%c7, %c0_17] : memref<16x96xf32, #tpu.memory_space<vmem>>, vector<1x32xf32>
    %c8 = arith.constant 8 : index
    %c0_18 = arith.constant 0 : index
    %22 = vector.load %arg6[%c8, %c0_18] : memref<16x96xf32, #tpu.memory_space<vmem>>, vector<1x32xf32>
    %cst_19 = arith.constant dense<0.000000e+00> : vector<32x96xf32>
    %23 = tpu.matmul %9, %10, %cst_19 {dimension_numbers = #tpu.dot_dimension_numbers<[1], [0], [0], [1], [0, 0, 1, 1], [], []>} : vector<32x32xf32>, vector<32x96xf32>, vector<32x96xf32> -> vector<32x96xf32>
    %24 = vector.broadcast %14 : vector<1x96xf32> to vector<32x96xf32>
    %25 = arith.addf %23, %24 : vector<32x96xf32>
    %26 = vector.extract_strided_slice %25 {offsets = [0, 0], sizes = [32, 32], strides = [1, 1]} : vector<32x96xf32> to vector<32x32xf32>
    %27 = vector.shape_cast %26 : vector<32x32xf32> to vector<4x8x32xf32>
    %28 = vector.extract_strided_slice %25 {offsets = [0, 32], sizes = [32, 32], strides = [1, 1]} : vector<32x96xf32> to vector<32x32xf32>
    %29 = vector.shape_cast %28 : vector<32x32xf32> to vector<4x8x32xf32>
    %30 = vector.extract_strided_slice %25 {offsets = [0, 64], sizes = [32, 32], strides = [1, 1]} : vector<32x96xf32> to vector<32x32xf32>
    %31 = vector.shape_cast %30 : vector<32x32xf32> to vector<4x8x32xf32>
    %c0_20 = arith.constant 0 : index
    %c0_21 = arith.constant 0 : index
    %32 = vector.load %arg2[%c0_20, %c0_21] : memref<4x8xf32, #tpu.memory_space<vmem>>, vector<4x8xf32>
    %cst_22 = arith.constant 1.000000e+00 : f32
    %33 = vector.broadcast %cst_22 : f32 to vector<4x8xf32>
    %34 = arith.subf %32, %33 : vector<4x8xf32>
    %cst_23 = arith.constant 1.000000e+04 : f32
    %35 = vector.broadcast %cst_23 : f32 to vector<4x8xf32>
    %36 = arith.mulf %34, %35 : vector<4x8xf32>
    %37 = vector.shape_cast %36 : vector<4x8xf32> to vector<4x1x8xf32>
    %38 = vector.extract_strided_slice %27 {offsets = [0, 0, 0], sizes = [4, 8, 16], strides = [1, 1, 1]} : vector<4x8x32xf32> to vector<4x8x16xf32>
    %39 = vector.extract_strided_slice %29 {offsets = [0, 0, 0], sizes = [4, 8, 16], strides = [1, 1, 1]} : vector<4x8x32xf32> to vector<4x8x16xf32>
    %40 = vector.extract_strided_slice %31 {offsets = [0, 0, 0], sizes = [4, 8, 16], strides = [1, 1, 1]} : vector<4x8x32xf32> to vector<4x8x16xf32>
    "tpu.trace_start"() <{level = 10 : i32, message = "bqd,bkd->bqk"}> : () -> ()
    %cst_24 = arith.constant dense<0.000000e+00> : vector<4x8x8xf32>
    %41 = tpu.matmul %38, %39, %cst_24 {dimension_numbers = #tpu.dot_dimension_numbers<[2], [2], [1], [1], [0, 0, 0, 1, 1, 1], [0], [0]>} : vector<4x8x16xf32>, vector<4x8x16xf32>, vector<4x8x8xf32> -> vector<4x8x8xf32>
    "tpu.trace_stop"() : () -> ()
    %42 = vector.broadcast %37 : vector<4x1x8xf32> to vector<4x8x8xf32>
    %43 = arith.addf %41, %42 : vector<4x8x8xf32>
    %cst_25 = arith.constant dense<0xFF800000> : vector<4x8xf32>
    %44 = vector.multi_reduction <maximumf>, %43, %cst_25 [2] : vector<4x8x8xf32> to vector<4x8xf32>
    %45 = vector.shape_cast %44 : vector<4x8xf32> to vector<4x8x1xf32>
    %46 = vector.broadcast %45 : vector<4x8x1xf32> to vector<4x8x8xf32>
    %47 = arith.subf %43, %46 : vector<4x8x8xf32>
    %48 = math.exp %47 : vector<4x8x8xf32>
    %cst_26 = arith.constant dense<0.000000e+00> : vector<4x8xf32>
    %49 = vector.multi_reduction <add>, %48, %cst_26 [2] : vector<4x8x8xf32> to vector<4x8xf32>
    %50 = vector.shape_cast %49 : vector<4x8xf32> to vector<4x8x1xf32>
    %51 = vector.broadcast %50 : vector<4x8x1xf32> to vector<4x8x8xf32>
    %52 = arith.divf %48, %51 : vector<4x8x8xf32>
    "tpu.trace_start"() <{level = 10 : i32, message = "bqk,bkd->bqd"}> : () -> ()
    %cst_27 = arith.constant dense<0.000000e+00> : vector<4x8x16xf32>
    %53 = tpu.matmul %52, %40, %cst_27 {dimension_numbers = #tpu.dot_dimension_numbers<[2], [1], [1], [2], [0, 0, 0, 1, 1, 2], [0], [0]>} : vector<4x8x8xf32>, vector<4x8x16xf32>, vector<4x8x16xf32> -> vector<4x8x16xf32>
    "tpu.trace_stop"() : () -> ()
    %54 = vector.shape_cast %53 : vector<4x8x16xf32> to vector<32x16xf32>
    %55 = vector.extract_strided_slice %11 {offsets = [0, 0], sizes = [16, 32], strides = [1, 1]} : vector<32x32xf32> to vector<16x32xf32>
    %cst_28 = arith.constant dense<0.000000e+00> : vector<32x32xf32>
    %56 = tpu.matmul %54, %55, %cst_28 {dimension_numbers = #tpu.dot_dimension_numbers<[1], [0], [0], [1], [0, 0, 1, 1], [], []>} : vector<32x16xf32>, vector<16x32xf32>, vector<32x32xf32> -> vector<32x32xf32>
    %57 = vector.extract_strided_slice %27 {offsets = [0, 0, 16], sizes = [4, 8, 16], strides = [1, 1, 1]} : vector<4x8x32xf32> to vector<4x8x16xf32>
    %58 = vector.extract_strided_slice %29 {offsets = [0, 0, 16], sizes = [4, 8, 16], strides = [1, 1, 1]} : vector<4x8x32xf32> to vector<4x8x16xf32>
    %59 = vector.extract_strided_slice %31 {offsets = [0, 0, 16], sizes = [4, 8, 16], strides = [1, 1, 1]} : vector<4x8x32xf32> to vector<4x8x16xf32>
    "tpu.trace_start"() <{level = 10 : i32, message = "bqd,bkd->bqk"}> : () -> ()
    %cst_29 = arith.constant dense<0.000000e+00> : vector<4x8x8xf32>
    %60 = tpu.matmul %57, %58, %cst_29 {dimension_numbers = #tpu.dot_dimension_numbers<[2], [2], [1], [1], [0, 0, 0, 1, 1, 1], [0], [0]>} : vector<4x8x16xf32>, vector<4x8x16xf32>, vector<4x8x8xf32> -> vector<4x8x8xf32>
    "tpu.trace_stop"() : () -> ()
    %61 = vector.broadcast %37 : vector<4x1x8xf32> to vector<4x8x8xf32>
    %62 = arith.addf %60, %61 : vector<4x8x8xf32>
    %cst_30 = arith.constant dense<0xFF800000> : vector<4x8xf32>
    %63 = vector.multi_reduction <maximumf>, %62, %cst_30 [2] : vector<4x8x8xf32> to vector<4x8xf32>
    %64 = vector.shape_cast %63 : vector<4x8xf32> to vector<4x8x1xf32>
    %65 = vector.broadcast %64 : vector<4x8x1xf32> to vector<4x8x8xf32>
    %66 = arith.subf %62, %65 : vector<4x8x8xf32>
    %67 = math.exp %66 : vector<4x8x8xf32>
    %cst_31 = arith.constant dense<0.000000e+00> : vector<4x8xf32>
    %68 = vector.multi_reduction <add>, %67, %cst_31 [2] : vector<4x8x8xf32> to vector<4x8xf32>
    %69 = vector.shape_cast %68 : vector<4x8xf32> to vector<4x8x1xf32>
    %70 = vector.broadcast %69 : vector<4x8x1xf32> to vector<4x8x8xf32>
    %71 = arith.divf %67, %70 : vector<4x8x8xf32>
    "tpu.trace_start"() <{level = 10 : i32, message = "bqk,bkd->bqd"}> : () -> ()
    %cst_32 = arith.constant dense<0.000000e+00> : vector<4x8x16xf32>
    %72 = tpu.matmul %71, %59, %cst_32 {dimension_numbers = #tpu.dot_dimension_numbers<[2], [1], [1], [2], [0, 0, 0, 1, 1, 2], [0], [0]>} : vector<4x8x8xf32>, vector<4x8x16xf32>, vector<4x8x16xf32> -> vector<4x8x16xf32>
    "tpu.trace_stop"() : () -> ()
    %73 = vector.shape_cast %72 : vector<4x8x16xf32> to vector<32x16xf32>
    %74 = vector.extract_strided_slice %11 {offsets = [16, 0], sizes = [16, 32], strides = [1, 1]} : vector<32x32xf32> to vector<16x32xf32>
    %cst_33 = arith.constant dense<0.000000e+00> : vector<32x32xf32>
    %75 = tpu.matmul %73, %74, %cst_33 {dimension_numbers = #tpu.dot_dimension_numbers<[1], [0], [0], [1], [0, 0, 1, 1], [], []>} : vector<32x16xf32>, vector<16x32xf32>, vector<32x32xf32> -> vector<32x32xf32>
    %76 = arith.addf %56, %75 : vector<32x32xf32>
    %77 = vector.broadcast %15 : vector<1x32xf32> to vector<32x32xf32>
    %78 = arith.addf %76, %77 : vector<32x32xf32>
    %79 = arith.addf %9, %78 : vector<32x32xf32>
    %cst_34 = arith.constant dense<0.000000e+00> : vector<32xf32>
    %80 = vector.multi_reduction <add>, %79, %cst_34 [1] : vector<32x32xf32> to vector<32xf32>
    %81 = vector.shape_cast %80 : vector<32xf32> to vector<32x1xf32>
    %cst_35 = arith.constant 3.200000e+01 : f32
    %82 = vector.broadcast %cst_35 : f32 to vector<32x1xf32>
    %83 = arith.divf %81, %82 : vector<32x1xf32>
    %84 = vector.broadcast %83 : vector<32x1xf32> to vector<32x32xf32>
    %85 = arith.subf %79, %84 : vector<32x32xf32>
    %86 = arith.mulf %85, %85 : vector<32x32xf32>
    %cst_36 = arith.constant dense<0.000000e+00> : vector<32xf32>
    %87 = vector.multi_reduction <add>, %86, %cst_36 [1] : vector<32x32xf32> to vector<32xf32>
    %88 = vector.shape_cast %87 : vector<32xf32> to vector<32x1xf32>
    %cst_37 = arith.constant 3.200000e+01 : f32
    %89 = vector.broadcast %cst_37 : f32 to vector<32x1xf32>
    %90 = arith.divf %88, %89 : vector<32x1xf32>
    %91 = vector.broadcast %83 : vector<32x1xf32> to vector<32x32xf32>
    %92 = arith.subf %79, %91 : vector<32x32xf32>
    %cst_38 = arith.constant 9.99999996E-13 : f32
    %93 = vector.broadcast %cst_38 : f32 to vector<32x1xf32>
    %94 = arith.addf %90, %93 : vector<32x1xf32>
    %95 = math.rsqrt %94 : vector<32x1xf32>
    %96 = vector.broadcast %95 : vector<32x1xf32> to vector<32x32xf32>
    %97 = arith.mulf %92, %96 : vector<32x32xf32>
    %98 = vector.broadcast %16 : vector<1x32xf32> to vector<32x32xf32>
    %99 = arith.mulf %97, %98 : vector<32x32xf32>
    %100 = vector.broadcast %17 : vector<1x32xf32> to vector<32x32xf32>
    %101 = arith.addf %99, %100 : vector<32x32xf32>
    %cst_39 = arith.constant dense<0.000000e+00> : vector<32x64xf32>
    %102 = tpu.matmul %101, %12, %cst_39 {dimension_numbers = #tpu.dot_dimension_numbers<[1], [0], [0], [1], [0, 0, 1, 1], [], []>} : vector<32x32xf32>, vector<32x64xf32>, vector<32x64xf32> -> vector<32x64xf32>
    %103 = vector.broadcast %18 : vector<1x64xf32> to vector<32x64xf32>
    %104 = arith.addf %102, %103 : vector<32x64xf32>
    %105 = arith.mulf %104, %104 : vector<32x64xf32>
    %106 = arith.mulf %104, %105 : vector<32x64xf32>
    %cst_40 = arith.constant 4.471500e-02 : f32
    %107 = vector.broadcast %cst_40 : f32 to vector<32x64xf32>
    %108 = arith.mulf %107, %106 : vector<32x64xf32>
    %109 = arith.addf %104, %108 : vector<32x64xf32>
    %cst_41 = arith.constant 0.797884583 : f32
    %110 = vector.broadcast %cst_41 : f32 to vector<32x64xf32>
    %111 = arith.mulf %110, %109 : vector<32x64xf32>
    %112 = math.tanh %111 : vector<32x64xf32>
    %cst_42 = arith.constant 1.000000e+00 : f32
    %113 = vector.broadcast %cst_42 : f32 to vector<32x64xf32>
    %114 = arith.addf %113, %112 : vector<32x64xf32>
    %cst_43 = arith.constant 5.000000e-01 : f32
    %115 = vector.broadcast %cst_43 : f32 to vector<32x64xf32>
    %116 = arith.mulf %115, %114 : vector<32x64xf32>
    %117 = arith.mulf %104, %116 : vector<32x64xf32>
    %c0_44 = arith.constant 0 : index
    %c0_45 = arith.constant 0 : index
    %118 = vector.load %arg5[%c0_44, %c0_45] : memref<64x32xf32, #tpu.memory_space<vmem>>, vector<64x32xf32>
    %cst_46 = arith.constant dense<0.000000e+00> : vector<32x32xf32>
    %119 = tpu.matmul %117, %118, %cst_46 {dimension_numbers = #tpu.dot_dimension_numbers<[1], [0], [0], [1], [0, 0, 1, 1], [], []>} : vector<32x64xf32>, vector<64x32xf32>, vector<32x32xf32> -> vector<32x32xf32>
    %120 = arith.addf %101, %119 : vector<32x32xf32>
    %121 = vector.broadcast %19 : vector<1x32xf32> to vector<32x32xf32>
    %122 = arith.addf %120, %121 : vector<32x32xf32>
    %cst_47 = arith.constant dense<0.000000e+00> : vector<32xf32>
    %123 = vector.multi_reduction <add>, %122, %cst_47 [1] : vector<32x32xf32> to vector<32xf32>
    %124 = vector.shape_cast %123 : vector<32xf32> to vector<32x1xf32>
    %cst_48 = arith.constant 3.200000e+01 : f32
    %125 = vector.broadcast %cst_48 : f32 to vector<32x1xf32>
    %126 = arith.divf %124, %125 : vector<32x1xf32>
    %127 = vector.broadcast %126 : vector<32x1xf32> to vector<32x32xf32>
    %128 = arith.subf %122, %127 : vector<32x32xf32>
    %129 = arith.mulf %128, %128 : vector<32x32xf32>
    %cst_49 = arith.constant dense<0.000000e+00> : vector<32xf32>
    %130 = vector.multi_reduction <add>, %129, %cst_49 [1] : vector<32x32xf32> to vector<32xf32>
    %131 = vector.shape_cast %130 : vector<32xf32> to vector<32x1xf32>
    %cst_50 = arith.constant 3.200000e+01 : f32
    %132 = vector.broadcast %cst_50 : f32 to vector<32x1xf32>
    %133 = arith.divf %131, %132 : vector<32x1xf32>
    %134 = vector.broadcast %126 : vector<32x1xf32> to vector<32x32xf32>
    %135 = arith.subf %122, %134 : vector<32x32xf32>
    %cst_51 = arith.constant 9.99999996E-13 : f32
    %136 = vector.broadcast %cst_51 : f32 to vector<32x1xf32>
    %137 = arith.addf %133, %136 : vector<32x1xf32>
    %138 = math.rsqrt %137 : vector<32x1xf32>
    %139 = vector.broadcast %138 : vector<32x1xf32> to vector<32x32xf32>
    %140 = arith.mulf %135, %139 : vector<32x32xf32>
    %141 = vector.broadcast %20 : vector<1x32xf32> to vector<32x32xf32>
    %142 = arith.mulf %140, %141 : vector<32x32xf32>
    %143 = vector.broadcast %21 : vector<1x32xf32> to vector<32x32xf32>
    %144 = arith.addf %142, %143 : vector<32x32xf32>
    %145 = vector.shape_cast %144 : vector<32x32xf32> to vector<4x8x32xf32>
    %146 = vector.extract_strided_slice %145 {offsets = [0, 0, 0], sizes = [4, 1, 32], strides = [1, 1, 1]} : vector<4x8x32xf32> to vector<4x1x32xf32>
    %147 = vector.shape_cast %146 : vector<4x1x32xf32> to vector<4x32xf32>
    %cst_52 = arith.constant dense<0.000000e+00> : vector<4x32xf32>
    %148 = tpu.matmul %147, %13, %cst_52 {dimension_numbers = #tpu.dot_dimension_numbers<[1], [0], [0], [1], [0, 0, 1, 1], [], []>} : vector<4x32xf32>, vector<32x32xf32>, vector<4x32xf32> -> vector<4x32xf32>
    %149 = vector.broadcast %22 : vector<1x32xf32> to vector<4x32xf32>
    %150 = arith.addf %148, %149 : vector<4x32xf32>
    %151 = math.tanh %150 : vector<4x32xf32>
    %c0_53 = arith.constant 0 : index
    %c0_54 = arith.constant 0 : index
    %c0_55 = arith.constant 0 : index
    %152 = vector.load %arg7[%c0_53, %c0_54, %c0_55] : memref<2x40x128xf32, #tpu.memory_space<vmem>>, vector<1x40x128xf32>
    %153 = vector.shape_cast %152 : vector<1x40x128xf32> to vector<40x128xf32>
    %c1_56 = arith.constant 1 : index
    %c0_57 = arith.constant 0 : index
    %c0_58 = arith.constant 0 : index
    %154 = vector.load %arg7[%c1_56, %c0_57, %c0_58] : memref<2x40x128xf32, #tpu.memory_space<vmem>>, vector<1x40x128xf32>
    %155 = vector.shape_cast %154 : vector<1x40x128xf32> to vector<40x128xf32>
    %156 = vector.extract_strided_slice %151 {offsets = [0, 0], sizes = [2, 32], strides = [1, 1]} : vector<4x32xf32> to vector<2x32xf32>
    %157 = vector.extract_strided_slice %153 {offsets = [0, 0], sizes = [32, 128], strides = [1, 1]} : vector<40x128xf32> to vector<32x128xf32>
    %cst_59 = arith.constant dense<0.000000e+00> : vector<2x128xf32>
    %158 = tpu.matmul %156, %157, %cst_59 {dimension_numbers = #tpu.dot_dimension_numbers<[1], [0], [0], [1], [0, 0, 1, 1], [], []>} : vector<2x32xf32>, vector<32x128xf32>, vector<2x128xf32> -> vector<2x128xf32>
    %159 = vector.extract_strided_slice %153 {offsets = [32, 0], sizes = [1, 128], strides = [1, 1]} : vector<40x128xf32> to vector<1x128xf32>
    %160 = vector.broadcast %159 : vector<1x128xf32> to vector<2x128xf32>
    %161 = arith.addf %158, %160 : vector<2x128xf32>
    %162 = vector.extract_strided_slice %151 {offsets = [2, 0], sizes = [2, 32], strides = [1, 1]} : vector<4x32xf32> to vector<2x32xf32>
    %163 = vector.extract_strided_slice %155 {offsets = [0, 0], sizes = [32, 128], strides = [1, 1]} : vector<40x128xf32> to vector<32x128xf32>
    %cst_60 = arith.constant dense<0.000000e+00> : vector<2x128xf32>
    %164 = tpu.matmul %162, %163, %cst_60 {dimension_numbers = #tpu.dot_dimension_numbers<[1], [0], [0], [1], [0, 0, 1, 1], [], []>} : vector<2x32xf32>, vector<32x128xf32>, vector<2x128xf32> -> vector<2x128xf32>
    %165 = vector.extract_strided_slice %155 {offsets = [32, 0], sizes = [1, 128], strides = [1, 1]} : vector<40x128xf32> to vector<1x128xf32>
    %166 = vector.broadcast %165 : vector<1x128xf32> to vector<2x128xf32>
    %167 = arith.addf %164, %166 : vector<2x128xf32>
    %168 = tpu.concatenate %161, %167 in 0 : vector<2x128xf32>, vector<2x128xf32> -> vector<4x128xf32>
    %c0_61 = arith.constant 0 : index
    %c0_62 = arith.constant 0 : index
    %169 = vector.load %arg8[%c0_61, %c0_62] : memref<4x128xf32, #tpu.memory_space<vmem>>, vector<4x128xf32>
    tpu.vector_store %arg8[%c0_61, %c0_62], %168 {strides = array<i32>} : memref<4x128xf32, #tpu.memory_space<vmem>>, vector<4x128xf32>,
    return
  }
  func.func @transform_0(%arg0: i32) -> (i32, i32) {
    %c0_i32 = arith.constant 0 : i32
    %c0_i32_0 = arith.constant 0 : i32
    %c0_i32_1 = arith.constant 0 : i32
    return %c0_i32, %c0_i32_0 : i32, i32
  }
  func.func @transform_1(%arg0: i32) -> (i32, i32) {
    %c0_i32 = arith.constant 0 : i32
    %c0_i32_0 = arith.constant 0 : i32
    %c0_i32_1 = arith.constant 0 : i32
    return %c0_i32, %c0_i32_0 : i32, i32
  }
  func.func @transform_2(%arg0: i32) -> (i32, i32) {
    %c0_i32 = arith.constant 0 : i32
    %c0_i32_0 = arith.constant 0 : i32
    %c0_i32_1 = arith.constant 0 : i32
    return %c0_i32, %c0_i32_0 : i32, i32
  }
  func.func @transform_3(%arg0: i32) -> (i32, i32) {
    %c0_i32 = arith.constant 0 : i32
    %c0_i32_0 = arith.constant 0 : i32
    %c0_i32_1 = arith.constant 0 : i32
    return %c0_i32, %c0_i32_0 : i32, i32
  }
  func.func @transform_4(%arg0: i32) -> (i32, i32) {
    %c0_i32 = arith.constant 0 : i32
    %c0_i32_0 = arith.constant 0 : i32
    %c0_i32_1 = arith.constant 0 : i32
    return %c0_i32, %c0_i32_0 : i32, i32
  }
  func.func @transform_5(%arg0: i32) -> (i32, i32) {
    %c0_i32 = arith.constant 0 : i32
    %c0_i32_0 = arith.constant 0 : i32
    %c0_i32_1 = arith.constant 0 : i32
    return %c0_i32, %c0_i32_0 : i32, i32
  }
  func.func @transform_6(%arg0: i32) -> (i32, i32, i32) {
    %c0_i32 = arith.constant 0 : i32
    %c0_i32_0 = arith.constant 0 : i32
    %c0_i32_1 = arith.constant 0 : i32
    %c0_i32_2 = arith.constant 0 : i32
    return %c0_i32, %c0_i32_0, %c0_i32_1 : i32, i32, i32
  }
  func.func @transform_7(%arg0: i32) -> (i32, i32) {
    %c0_i32 = arith.constant 0 : i32
    %c0_i32_0 = arith.constant 0 : i32
    %c0_i32_1 = arith.constant 0 : i32
    return %c0_i32, %c0_i32_0 : i32, i32
  }
}

</mosaic_0001>

<bundles_post_ra>
// kernel: text_model_sf_forward.1
= control target key start
LH: loop header
LB: loop body
LE: loop exit
PB: predicated region body
PF: predicated region fallthrough
CT: control target
= control target key end

     0   :  { %v3019_v0 = vmov 0   ;;  %v3020_v11 = vmov 0.0   ;;  %v30_v15 = vlaneseq  ;;  %vm64_vm0 = vcmask 261120   ;;  %s3022_s10 = smov 96   ;;  %s3023_s11 = smov 64   ;;  %s3497_s0 = inlined_call_operand.vmem [shape: s32[32,1], index: 0, kind: input, shape index: {}]   ;;  %s3498_s2 = inlined_call_operand.vmem [shape: f32[64,32], index: 2, kind: input, shape index: {}]   ;;  %s3499_s3 = inlined_call_operand.vmem [shape: f32[32,512], index: 3, kind: input, shape index: {}]   ;;  %s3500_s5 = inlined_call_operand.vmem [shape: f32[16,96], index: 5, kind: input, shape index: {}]   ;;  %s3501_s1 = inlined_call_operand.vmem [shape: f32[4,8], index: 1, kind: input, shape index: {}]   ;;  %s3502_s4 = inlined_call_operand.vmem [shape: f32[64,32], index: 4, kind: input, shape index: {}]   ;;  %s3503_s6 = inlined_call_operand.vmem [shape: f32[2,40,128], index: 6, kind: input, shape index: {}]   ;;  %s3504_s7 = inlined_call_operand.vmem [shape: f32[4,128], index: 7, kind: output, shape index: {}]  }
   0x1   :  { %2959 = vset.pattern.permute.xlu0 %v3019_v0  ;;  %v26_v1 = vld [vmem:[%s3497_s0] sm:$0xff]  ;;  %2960 = vset.pattern.permute.xlu1 %v3019_v0  ;;  %v28_v2 = vld [vmem:[%s3497_s0 + $0x10] sm:$0xff]  ;;  %v27_v3 = vld [vmem:[%s3497_s0 + $0x8] sm:$0xff]  ;;  %vm3021_vm5 = vmmov 0   ;;  %vm339_vm6 = vcmask 130048   ;;  %vm645_vm7 = vcmask 64512  }
   0x2   :  { %33 = vperm.xlu0 %2959, %v26_v1   ;;  %39 = vperm.xlu1 %2960, %v28_v2   ;;  %v56_v4 = vld [vmem:[%s3498_s2] sm:$0xff]  ;;  %v57_v5 = vld [vmem:[%s3498_s2 + $0x8] sm:$0xff]  ;;  %v29_v6 = vld [vmem:[%s3497_s0 + $0x18] sm:$0xff]  ;;  %v31_v16 = vand.u32 127, %v30_v15  ;;  %v3024_v55 = vmov 1966171168  }
   0x3   :  { %v2879_v7 = vpack.c.bf16 %v57_v5, %v56_v4  ;;  %v58_v8 = vld [vmem:[%s3498_s2 + $0x10] sm:$0xff]  ;;  %v59_v9 = vld [vmem:[%s3498_s2 + $0x18] sm:$0xff]  ;;  %v162_v12 = vld [vmem:[%s3499_s3] sm:$0xff]  ;;  %v293_v56 = vunpack.c.l.s4 %v3024_v55  ;;  %v296_v60 = vshrl.u32 %v30_v15, 7  ;;  %s3026_s14 = smov 112   ;;  %s3027_s15 = smov 48  }
   0x4   :  { %v2883_v10 = vpack.c.bf16 %v59_v9, %v58_v8  ;;  %v163_v13 = vld [vmem:[%s3499_s3 + $0x20] sm:$0xff]  ;;  %v61_v29 = vld [vmem:[%s3498_s2 + $0x28] sm:$0xff]  ;;  %v63_v33 = vld [vmem:[%s3498_s2 + $0x38] sm:$0xff]  ;;  %vm2074_vm8 = vcmask 523264   ;;  %vm2261_vm9 = vcmask 1041409   ;;  %vm2264_vm10 = vcmask 1042434  }
   0x5   :  { %2880 = vmatprep.subr.bf16.mxu0 %v2879_v7  ;;  %v2887_v14 = vpack.c.bf16 %v163_v13, %v162_v12  ;;  %v164_v25 = vld [vmem:[%s3499_s3 + $0x40] sm:$0xff]  ;;  %v62_v35 = vld [vmem:[%s3498_s2 + $0x30] sm:$0xff]  ;;  %v294_v59 = vunpack.c.0.s8 %v293_v56  ;;  %v3197_v2 = vsub.s32 0, %v296_v60  ;;  %vm2267_vm11 = vcmask 1043459  }
   0x6   :  { %36 = vperm.xlu0 %2959, %v27_v3   ;;  %42 = vperm.xlu1 %2960, %v29_v6   ;;  %v165_v26 = vld [vmem:[%s3499_s3 + $0x60] sm:$0xff]  ;;  %vm2510_vm12 = vcmask 1041408  }
   0x7   :  { %2882 = vmatpush3.bf16.msra.mxu0 %v2879_v7  ;;  %2888 = vmatprep.subr.bf16.mxu1 %v2887_v14  ;;  %v2891_v27 = vpack.c.bf16 %v165_v26, %v164_v25  ;;  %v60_v28 = vld [vmem:[%s3498_s2 + $0x20] sm:$0xff]  ;;  %v297_v62 = vsub.s32 %v294_v59, %v296_v60 }
   0x8   :  { %2884 = vmatprep.subr.bf16.mxu0 %v2883_v10  ;;  %2890 = vmatpush3.bf16.msra.mxu1 %v2887_v14  ;;  %v2525_v40 = vld [vmem:[%s3500_s5] ss:$0 sm:$0xff] }
   0x9   :  { %2892 = vmatprep.subr.bf16.mxu1 %v2891_v27  ;;  %v288_v57 = vld [vmem:[%s3501_s1] sm:$0xf]  ;;  %s3025_s1 = smov 80  }
   0xa   :  { %v2530_v58 = vadd.f32 -1.0, %v288_v57 }
   0xb   :  { %2886 = vmatpush3.bf16.msra.mxu0 %v2883_v10 }
   0xc   :  { %2710 = vmatprep.subr.mxu0 %v3020_v11  ;;  %2894 = vmatpush3.bf16.msra.mxu1 %v2891_v27  ;;  %v290_v61 = vmul.f32 10000.0, %v2530_v58 }
   0xd   :  { %2715 = vmatprep.subr.mxu1 %v3020_v11 }
   0xe   :  { %v298_v63 = vrot.slane %v290_v61, %v297_v62 }
  0x10   :  { %v299_v0 = vcombine.high %v298_v63, %v298_v63  ;;  %v306_v3 = vrot.slane %v298_v63, %v297_v62 }
  0x12   :  { %v313_v1 = vrot.slane %v299_v0, %v297_v62  ;;  %v3203_v6 = vrot.slane %v306_v3, %v3197_v2  ;;  %v314_v8 = vcombine.high %v306_v3, %v306_v3 }
  0x14   :  { %v3200_v4 = vrot.slane %v313_v1, %v3197_v2  ;;  %v315_v5 = vcombine.high %v313_v1, %v313_v1 }
  0x16   :  { %v3207_v13 = vrot.slane %v315_v5, %v3197_v2 }
  0x81   :  { %v34_v17 = vpop.permute.xlu0 %33  ;;  %v40_v18 = vpop.permute.xlu1 %39 }
  0x82   :  { %vm44_vm1 = vcmp.eq.s32.totalorder %v31_v16, %v34_v17  ;;  %vm46_vm2 = vcmp.eq.s32.totalorder %v31_v16, %v40_v18 }
  0x83   :  { %v2517_v19 = vsel %vm44_vm1, 1.0, %v3020_v11  ;;  %v2519_v22 = vsel %vm46_vm2, 1.0, %v3020_v11 }
  0x84   :  { %2690 = vmatprep.mubr.msk.f32.mxu0 %vm64_vm0, %v2517_v19  ;;  %v3213_v19 = vrot.slane %v314_v8, %v3197_v2 }
  0x85   :  { %v37_v20 = vpop.permute.xlu0 %36  ;;  %v43_v21 = vpop.permute.xlu1 %42 }
  0x86   :  { %vm45_vm3 = vcmp.eq.s32.totalorder %v31_v16, %v37_v20  ;;  %vm47_vm4 = vcmp.eq.s32.totalorder %v31_v16, %v43_v21 }
  0x87   :  { %v2518_v23 = vsel %vm45_vm3, 1.0, %v3020_v11  ;;  %v2520_v24 = vsel %vm47_vm4, 1.0, %v3020_v11 }
  0x88   :  { %2691 = vmatmul.mubr.msk.f32.vlgmr.msra.gmra.mrb[0].mxu0 %vm64_vm0, %v2518_v23 }
  0x89   :  { %2693 = vmatprep.mubr.msk.f32.mxu0 %vm64_vm0, %v2519_v22 }
  0x8c   :  { %2694 = vmatmul.mubr.msk.f32.gmra.mrb[2].mxu0 %vm64_vm0, %v2520_v24 }
  0x8d   :  { %2712 = vmatprep.mubr.msk.f32.mxu0 %vm3021_vm5, %v3020_v11 }
 0x15b   :  { %v2692_v30 = vpop.f32.mrb[0].mxu0 }
 0x15c   :  { %v143_v31 = vpop.f32.mrb[1].mxu0  ;;  %v3127_v34 = vadd.f32 %v2692_v30, %v61_v29 }
 0x15d   :  { %v3122_v32 = vadd.f32 %v143_v31, %v60_v28 }
 0x15f   :  { %v2695_v36 = vpop.f32.mrb[2].mxu0  ;;  %2704 = vmatprep.mubr.msk.f32.mxu1 %vm64_vm0, %v3122_v32 }
 0x160   :  { %v3134_v37 = vadd.f32 %v2695_v36, %v63_v33  ;;  %v153_v38 = vpop.f32.mrb[3].mxu0  ;;  %2705 = vmatmul.mubr.msk.f32.vlgmr.msra.gmra.mrb[0].mxu1 %vm64_vm0, %v3127_v34 }
 0x161   :  { %v3138_v39 = vadd.f32 %v153_v38, %v62_v35 }
 0x163   :  { %2707 = vmatprep.mubr.msk.f32.mxu1 %vm64_vm0, %v3138_v39 }
 0x164   :  { %2708 = vmatmul.mubr.msk.f32.gmra.mrb[2].mxu1 %vm64_vm0, %v3134_v37 }
 0x165   :  { %2717 = vmatprep.mubr.msk.f32.mxu1 %vm3021_vm5, %v3020_v11 }
 0x233   :  { %v2706_v41 = vpop.f32.mrb[0].mxu1 }
 0x234   :  { %v3151_v42 = vadd.f32 %v2706_v41, %v2525_v40  ;;  %v269_v43 = vpop.f32.mrb[1].mxu1 }
 0x235   :  { %v3153_v44 = vadd.f32 %v2525_v40, %v269_v43 }
 0x236   :  { %415 = vrot.lane.b32.xlu1 %v3151_v42, %s3022_s10 }
 0x237   :  { %v2709_v45 = vpop.f32.mrb[2].mxu1  ;;  %337 = vrot.lane.b32.xlu0 %v3153_v44, %s3022_s10 }
 0x238   :  { %v3157_v46 = vadd.f32 %v2709_v45, %v2525_v40  ;;  %v279_v47 = vpop.f32.mrb[3].mxu1 }
 0x239   :  { %v3159_v48 = vadd.f32 %v2525_v40, %v279_v47 }
 0x23a   :  { %569 = vrot.lane.b32.xlu1 %v3157_v46, %s3022_s10 }
 0x23b   :  { %492 = vrot.lane.b32.xlu0 %v3159_v48, %s3022_s10 }
 0x23e   :  { %690 = vrot.lane.b32.xlu1 %v3153_v44, %s3023_s11 }
 0x23f   :  { %766 = vrot.lane.b32.xlu0 %v3151_v42, %s3023_s11 }
 0x242   :  { %918 = vrot.lane.b32.xlu1 %v3157_v46, %s3023_s11 }
 0x246   :  { %842 = vrot.lane.b32.xlu1 %v3159_v48, %s3023_s11 }
 0x2a8   :  { %v416_v49 = vpop.permute.xlu1 %415 }
 0x2a9   :  { %2716 = vmatpush3.xpose.msk.msra.mxu1 %vm339_vm6, %v416_v49  ;;  %v338_v50 = vpop.permute.xlu0 %337 }
 0x2aa   :  { %2711 = vmatpush3.xpose.msk.msra.mxu0 %vm339_vm6, %v338_v50  ;;  %2725 = vmatprep.subr.mxu1 %v3020_v11 }
 0x2ab   :  { %2720 = vmatprep.subr.mxu0 %v3020_v11 }
 0x2ac   :  { %2718 = vmatmul.mubr.msk.f32.vlgmr.msra.gmra.mrb[4].mxu1 %vm339_vm6, %v3151_v42  ;;  %v570_v51 = vpop.permute.xlu1 %569 }
 0x2ad   :  { %2713 = vmatmul.mubr.msk.f32.vlgmr.msra.gmra.mrb[4].mxu0 %vm339_vm6, %v3153_v44  ;;  %2726 = vmatpush3.xpose.msk.msra.mxu1 %vm339_vm6, %v570_v51  ;;  %v493_v52 = vpop.permute.xlu0 %492 }
 0x2ae   :  { %2721 = vmatpush3.xpose.msk.msra.mxu0 %vm339_vm6, %v493_v52  ;;  %2727 = vmatprep.mubr.msk.f32.mxu1 %vm3021_vm5, %v3020_v11 }
 0x2af   :  { %2722 = vmatprep.mubr.msk.f32.mxu0 %vm3021_vm5, %v3020_v11  ;;  %2730 = vmatprep.subr.mxu0 %v3020_v11 }
 0x2b0   :  { %2728 = vmatmul.mubr.msk.f32.vlgmr.msra.gmra.mrb[6].mxu1 %vm339_vm6, %v3157_v46  ;;  %v691_v53 = vpop.permute.xlu1 %690  ;;  %2735 = vmatprep.subr.mxu1 %v3020_v11 }
 0x2b1   :  { %2723 = vmatmul.mubr.msk.f32.vlgmr.msra.gmra.mrb[6].mxu0 %vm339_vm6, %v3159_v48  ;;  %v767_v54 = vpop.permute.xlu0 %766  ;;  %2737 = vmatprep.mubr.msk.f32.mxu1 %vm3021_vm5, %v3020_v11 }
 0x2b2   :  { %2731 = vmatpush3.msra.mxu0 %v691_v53  ;;  %2736 = vmatpush3.msra.mxu1 %v767_v54 }
 0x2b3   :  { %2745 = vmatprep.subr.mxu1 %v3020_v11  ;;  %2732 = vmatprep.mubr.msk.f32.mxu0 %vm3021_vm5, %v3020_v11 }
 0x2b4   :  { %2740 = vmatprep.subr.mxu0 %v3020_v11  ;;  %v919_v27 = vpop.permute.xlu1 %918 }
 0x2b8   :  { %v843_v28 = vpop.permute.xlu1 %842 }
 0x37f   :  { %v487_v7 = vpop.f32.mrb[4].mxu1 }
 0x380   :  { %v488_v9 = vadd.f32 %v487_v7, %v3200_v4  ;;  %v410_v10 = vpop.f32.mrb[4].mxu0  ;;  %v2719_v12 = vpop.f32.mrb[5].mxu1 }
 0x381   :  { %v411_v14 = vadd.f32 %v410_v10, %v3203_v6  ;;  %v2714_v15 = vpop.f32.mrb[5].mxu0 }
 0x382   :  { %v649_v16 = vsel %vm645_vm7, %v488_v9, -inf }
 0x383   :  { %v641_v17 = vpop.f32.mrb[6].mxu1  ;;  %650 = vmax.xlane.f32.xlu1 %v649_v16  ;;  %v646_v18 = vsel %vm645_vm7, %v411_v14, -inf }
 0x384   :  { %v642_v20 = vadd.f32 %v641_v17, %v3207_v13  ;;  %v2729_v21 = vpop.f32.mrb[7].mxu1  ;;  %647 = vmax.xlane.f32.xlu0 %v646_v18  ;;  %v564_v22 = vpop.f32.mrb[6].mxu0 }
 0x385   :  { %v2724_v23 = vpop.f32.mrb[7].mxu0  ;;  %v565_v25 = vadd.f32 %v564_v22, %v3213_v19 }
 0x386   :  { %v655_v24 = vsel %vm645_vm7, %v642_v20, -inf }
 0x387   :  { %v652_v26 = vsel %vm645_vm7, %v565_v25, -inf }
 0x388   :  { %656 = vmax.xlane.f32.xlu0 %v655_v24 }
 0x38c   :  { %653 = vmax.xlane.f32.xlu0 %v652_v26 }
 0x394   :  { %1074 = vrot.lane.b32.xlu1 %v3151_v42, %s3025_s1 }
 0x398   :  { %1072 = vrot.lane.b32.xlu1 %v3151_v42, %s3026_s14 }
 0x3a2   :  { %996 = vrot.lane.b32.xlu0 %v3153_v44, %s3025_s1 }
 0x410   :  { %v651_v29 = vpop.xlane.xlu1 %650 }
 0x411   :  { %v659_v30 = vsub.f32 %v488_v9, %v651_v29  ;;  %v648_v31 = vpop.xlane.xlu0 %647 }
 0x412   :  { %v658_v33 = vsub.f32 %v411_v14, %v648_v31 }
 0x413   :  { %v664_v35 = vmul.f32 1.442695, %v659_v30 }
 0x414   :  { %v662_v36 = vmul.f32 1.442695, %v658_v33  ;;  %v1075_v57 = vpop.permute.xlu1 %1074 }
 0x415   :  { %2961 = vpow2.f32 %v664_v35  ;;  %v657_v45 = vpop.xlane.xlu0 %656 }
 0x416   :  { %2963 = vpow2.f32 %v662_v36  ;;  %v661_v49 = vsub.f32 %v642_v20, %v657_v45 }
 0x418   :  { %v668_v51 = vmul.f32 1.442695, %v661_v49  ;;  %v1073_v59 = vpop.permute.xlu1 %1072 }
 0x419   :  { %v654_v47 = vpop.xlane.xlu0 %653 }
 0x41a   :  { %v660_v50 = vsub.f32 %v565_v25, %v654_v47  ;;  %2965 = vpow2.f32 %v668_v51 }
 0x41c   :  { %v666_v52 = vmul.f32 1.442695, %v660_v50 }
 0x41d   :  { %v997_v58 = vpop.permute.xlu0 %996 }
 0x41e   :  { %2967 = vpow2.f32 %v666_v52 }
 0x41f   :  { %v2962_v38 = vpop.eup %2961 }
 0x420   :  { %v2964_v40 = vpop.eup %2963  ;;  %v673_v41 = vsel %vm645_vm7, %v2962_v38, 0.0 }
 0x421   :  { %674 = vadd.xlane.f32.xlu0 %v673_v41  ;;  %v670_v43 = vsel %vm645_vm7, %v2964_v40, 0.0 }
 0x422   :  { %671 = vadd.xlane.f32.xlu1 %v670_v43 }
 0x424   :  { %v2966_v53 = vpop.eup %2965 }
 0x425   :  { %v679_v55 = vsel %vm645_vm7, %v2966_v53, 0.0 }
 0x428   :  { %v2968_v54 = vpop.eup %2967 }
 0x429   :  { %v676_v56 = vsel %vm645_vm7, %v2968_v54, 0.0 }
 0x433   :  { %1230 = vrot.lane.b32.xlu1 %v3157_v46, %s3025_s1 }
 0x437   :  { %994 = vrot.lane.b32.xlu0 %v3153_v44, %s3026_s14 }
 0x456   :  { %680 = vadd.xlane.f32.xlu0 %v679_v55 }
 0x457   :  { %677 = vadd.xlane.f32.xlu1 %v676_v56 }
 0x468   :  { %1228 = vrot.lane.b32.xlu1 %v3157_v46, %s3026_s14 }
 0x46c   :  { %1152 = vrot.lane.b32.xlu0 %v3159_v48, %s3025_s1 }
 0x470   :  { %1150 = vrot.lane.b32.xlu0 %v3159_v48, %s3026_s14 }
 0x4ae   :  { %v675_v60 = vpop.xlane.xlu0 %674 }
 0x4af   :  { %2969 = vrcp.f32 %v675_v60  ;;  %v672_v61 = vpop.xlane.xlu1 %671 }
 0x4b0   :  { %2971 = vrcp.f32 %v672_v61 }
 0x4b2   :  { %v995_v3 = vpop.permute.xlu0 %994 }
 0x4b3   :  { %v1231_v5 = vpop.permute.xlu1 %1230 }
 0x4b9   :  { %v2970_v62 = vpop.eup %2969 }
 0x4ba   :  { %v2972_v63 = vpop.eup %2971  ;;  %v685_v0 = vmul.f32 %v2970_v62, %v2962_v38 }
 0x4bb   :  { %v683_v1 = vmul.f32 %v2972_v63, %v2964_v40 }
 0x4bc   :  { %2738 = vmatmul.mubr.msk.f32.vlgmr.msra.gmra.mrb[8].mxu1 %vm645_vm7, %v685_v0 }
 0x4bd   :  { %2746 = vmatpush3.msra.mxu1 %v919_v27  ;;  %2733 = vmatmul.mubr.msk.f32.vlgmr.msra.gmra.mrb[8].mxu0 %vm645_vm7, %v683_v1 }
 0x4be   :  { %2741 = vmatpush3.msra.mxu0 %v843_v28  ;;  %2747 = vmatprep.mubr.msk.f32.mxu1 %vm3021_vm5, %v3020_v11 }
 0x4bf   :  { %2755 = vmatprep.subr.mxu1 %v3020_v11  ;;  %2742 = vmatprep.mubr.msk.f32.mxu0 %vm3021_vm5, %v3020_v11 }
 0x4c0   :  { %2750 = vmatprep.subr.mxu0 %v3020_v11 }
 0x4e3   :  { %v681_v7 = vpop.xlane.xlu0 %680 }
 0x4e4   :  { %2973 = vrcp.f32 %v681_v7  ;;  %v678_v8 = vpop.xlane.xlu1 %677 }
 0x4e5   :  { %2975 = vrcp.f32 %v678_v8 }
 0x4e7   :  { %v1153_v15 = vpop.permute.xlu0 %1152 }
 0x4e8   :  { %v1229_v16 = vpop.permute.xlu1 %1228 }
 0x4eb   :  { %v1151_v17 = vpop.permute.xlu0 %1150 }
 0x4ee   :  { %v2974_v9 = vpop.eup %2973 }
 0x4ef   :  { %v2976_v10 = vpop.eup %2975  ;;  %v689_v12 = vmul.f32 %v2974_v9, %v2966_v53 }
 0x4f0   :  { %v687_v14 = vmul.f32 %v2976_v10, %v2968_v54 }
 0x4f1   :  { %2748 = vmatmul.mubr.msk.f32.vlgmr.msra.gmra.mrb[10].mxu1 %vm645_vm7, %v689_v12 }
 0x4f2   :  { %2756 = vmatpush3.xpose.msk.msra.mxu1 %vm339_vm6, %v1075_v57  ;;  %2743 = vmatmul.mubr.msk.f32.vlgmr.msra.gmra.mrb[10].mxu0 %vm645_vm7, %v687_v14 }
 0x4f3   :  { %2751 = vmatpush3.xpose.msk.msra.mxu0 %vm339_vm6, %v997_v58  ;;  %2757 = vmatprep.mubr.msk.f32.mxu1 %vm3021_vm5, %v3020_v11 }
 0x4f4   :  { %2765 = vmatprep.subr.mxu1 %v3020_v11  ;;  %2752 = vmatprep.mubr.msk.f32.mxu0 %vm3021_vm5, %v3020_v11 }
 0x4f5   :  { %2758 = vmatmul.mubr.msk.f32.vlgmr.msra.gmra.mrb[12].mxu1 %vm339_vm6, %v1073_v59  ;;  %2760 = vmatprep.subr.mxu0 %v3020_v11 }
 0x4f6   :  { %2766 = vmatpush3.xpose.msk.msra.mxu1 %vm339_vm6, %v1231_v5  ;;  %2753 = vmatmul.mubr.msk.f32.vlgmr.msra.gmra.mrb[12].mxu0 %vm339_vm6, %v995_v3 }
 0x4f7   :  { %2761 = vmatpush3.xpose.msk.msra.mxu0 %vm339_vm6, %v1153_v15  ;;  %2767 = vmatprep.mubr.msk.f32.mxu1 %vm3021_vm5, %v3020_v11 }
 0x4f8   :  { %2762 = vmatprep.mubr.msk.f32.mxu0 %vm3021_vm5, %v3020_v11  ;;  %2770 = vmatprep.subr.mxu0 %v3020_v11 }
 0x4f9   :  { %2768 = vmatmul.mubr.msk.f32.vlgmr.msra.gmra.mrb[14].mxu1 %vm339_vm6, %v1229_v16  ;;  %2775 = vmatprep.subr.mxu1 %v3020_v11 }
 0x4fa   :  { %2763 = vmatmul.mubr.msk.f32.vlgmr.msra.gmra.mrb[14].mxu0 %vm339_vm6, %v1151_v17  ;;  %2777 = vmatprep.mubr.msk.f32.mxu1 %vm3021_vm5, %v3020_v11 }
 0x4fb   :  { %2772 = vmatprep.mubr.msk.f32.mxu0 %vm3021_vm5, %v3020_v11 }
 0x58f   :  { %v3273_v18 = vpop.f32.mrb[8].mxu1 }
 0x590   :  { %v3275_v20 = vpop.f32.mrb[8].mxu0  ;;  %v2739_v21 = vpop.f32.mrb[9].mxu1 }
 0x591   :  { %v2734_v22 = vpop.f32.mrb[9].mxu0 }
 0x5c4   :  { %v3277_v23 = vpop.f32.mrb[10].mxu1 }
 0x5c5   :  { %v3279_v24 = vpop.f32.mrb[10].mxu0  ;;  %v2749_v25 = vpop.f32.mrb[11].mxu1 }
 0x5c6   :  { %v2744_v26 = vpop.f32.mrb[11].mxu0 }
 0x5c8   :  { %v1146_v27 = vpop.f32.mrb[12].mxu1 }
 0x5c9   :  { %v1147_v28 = vadd.f32 %v1146_v27, %v3200_v4  ;;  %v1068_v29 = vpop.f32.mrb[12].mxu0  ;;  %v2759_v30 = vpop.f32.mrb[13].mxu1 }
 0x5ca   :  { %v1069_v31 = vadd.f32 %v1068_v29, %v3203_v6  ;;  %v2754_v33 = vpop.f32.mrb[13].mxu0  ;;  %v167_v29 = vld [vmem:[%s3499_s3 + $0x28] sm:$0xff] }
 0x5cb   :  { %v1309_v35 = vsel %vm645_vm7, %v1147_v28, -inf }
 0x5cc   :  { %1310 = vmax.xlane.f32.xlu1 %v1309_v35  ;;  %v1302_v36 = vpop.f32.mrb[14].mxu1  ;;  %v1306_v38 = vsel %vm645_vm7, %v1069_v31, -inf }
 0x5cd   :  { %1307 = vmax.xlane.f32.xlu0 %v1306_v38  ;;  %v1224_v40 = vpop.f32.mrb[14].mxu0  ;;  %v2769_v41 = vpop.f32.mrb[15].mxu1  ;;  %v1303_v47 = vadd.f32 %v1302_v36, %v3207_v13 }
 0x5ce   :  { %v1225_v43 = vadd.f32 %v1224_v40, %v3213_v19  ;;  %v2764_v45 = vpop.f32.mrb[15].mxu0 }
 0x5cf   :  { %v1315_v6 = vsel %vm645_vm7, %v1303_v47, -inf  ;;  %v2563_v45 = vld [vmem:[%s3500_s5 + $0x1] ss:$0 sm:$0xff] }
 0x5d0   :  { %v1312_v4 = vsel %vm645_vm7, %v1225_v43, -inf }
 0x5d1   :  { %1313 = vmax.xlane.f32.xlu0 %v1312_v4 }
 0x5d5   :  { %1316 = vmax.xlane.f32.xlu0 %v1315_v6 }
 0x5dd   :  { %1350 = vrot.lane.b32.xlu1 %v3153_v44, %s3027_s15 }
 0x659   :  { %v1311_v49 = vpop.xlane.xlu1 %1310 }
 0x65a   :  { %v1319_v50 = vsub.f32 %v1147_v28, %v1311_v49  ;;  %v1308_v51 = vpop.xlane.xlu0 %1307  ;;  %v166_v28 = vld [vmem:[%s3499_s3 + $0x8] sm:$0xff] }
 0x65b   :  { %v1318_v52 = vsub.f32 %v1069_v31, %v1308_v51  ;;  %v2899_v30 = vpack.c.bf16 %v167_v29, %v166_v28 }
 0x65c   :  { %v1324_v53 = vmul.f32 1.442695, %v1319_v50 }
 0x65d   :  { %v1322_v54 = vmul.f32 1.442695, %v1318_v52  ;;  %v1351_v19 = vpop.permute.xlu1 %1350 }
 0x65e   :  { %2977 = vpow2.f32 %v1324_v53  ;;  %2771 = vmatpush3.msra.mxu0 %v1351_v19  ;;  %v1314_v13 = vpop.xlane.xlu0 %1313 }
 0x65f   :  { %2979 = vpow2.f32 %v1322_v54  ;;  %2780 = vmatprep.subr.mxu0 %v3020_v11  ;;  %v1320_v63 = vsub.f32 %v1225_v43, %v1314_v13 }
 0x661   :  { %v1326_v0 = vmul.f32 1.442695, %v1320_v63 }
 0x662   :  { %v1317_v55 = vpop.xlane.xlu0 %1316 }
 0x663   :  { %v1321_v56 = vsub.f32 %v1303_v47, %v1317_v55 }
 0x665   :  { %v1328_v57 = vmul.f32 1.442695, %v1321_v56 }
 0x667   :  { %2981 = vpow2.f32 %v1328_v57 }
 0x668   :  { %v2978_v58 = vpop.eup %2977  ;;  %2983 = vpow2.f32 %v1326_v0 }
 0x669   :  { %v2980_v59 = vpop.eup %2979  ;;  %v1333_v44 = vsel %vm645_vm7, %v2978_v58, 0.0 }
 0x66a   :  { %1334 = vadd.xlane.f32.xlu0 %v1333_v44  ;;  %v1330_v60 = vsel %vm645_vm7, %v2980_v59, 0.0 }
 0x66b   :  { %1331 = vadd.xlane.f32.xlu1 %v1330_v60 }
 0x671   :  { %v2982_v61 = vpop.eup %2981 }
 0x672   :  { %v1339_v62 = vsel %vm645_vm7, %v2982_v61, 0.0  ;;  %v2984_v1 = vpop.eup %2983 }
 0x673   :  { %1340 = vadd.xlane.f32.xlu0 %v1339_v62  ;;  %v1336_v3 = vsel %vm645_vm7, %v2984_v1, 0.0 }
 0x67c   :  { %1502 = vrot.lane.b32.xlu1 %v3159_v48, %s3027_s15  ;;  %v169_v48 = vld [vmem:[%s3499_s3 + $0x68] sm:$0xff] }
 0x689   :  { %1426 = vrot.lane.b32.xlu0 %v3151_v42, %s3027_s15  ;;  %v168_v42 = vld [vmem:[%s3499_s3 + $0x48] sm:$0xff] }
 0x6a0   :  { %1337 = vadd.xlane.f32.xlu1 %v1336_v3 }
 0x6b1   :  { %1578 = vrot.lane.b32.xlu1 %v3157_v46, %s3027_s15  ;;  %v2895_v46 = vpack.c.bf16 %v169_v48, %v168_v42  ;;  %v170_v42 = vld [vmem:[%s3499_s3 + $0x10] sm:$0xff] }
 0x6b2   :  { %v171_v48 = vld [vmem:[%s3499_s3 + $0x30] sm:$0xff] }
 0x6f7   :  { %v1335_v5 = vpop.xlane.xlu0 %1334 }
 0x6f8   :  { %2985 = vrcp.f32 %v1335_v5  ;;  %v1332_v7 = vpop.xlane.xlu1 %1331 }
 0x6f9   :  { %2987 = vrcp.f32 %v1332_v7 }
 0x6fc   :  { %v1503_v16 = vpop.permute.xlu1 %1502 }
 0x700   :  { %v1341_v8 = vpop.xlane.xlu0 %1340 }
 0x701   :  { %2989 = vrcp.f32 %v1341_v8 }
 0x702   :  { %v2986_v9 = vpop.eup %2985 }
 0x703   :  { %v2988_v10 = vpop.eup %2987  ;;  %v1345_v12 = vmul.f32 %v2986_v9, %v2978_v58 }
 0x704   :  { %v1343_v14 = vmul.f32 %v2988_v10, %v2980_v59  ;;  %v1427_v15 = vpop.permute.xlu0 %1426  ;;  %v2903_v10 = vpack.c.bf16 %v171_v48, %v170_v42 }
 0x705   :  { %2776 = vmatpush3.msra.mxu1 %v1427_v15 }
 0x706   :  { %2773 = vmatmul.mubr.msk.f32.vlgmr.msra.gmra.mrb[16].mxu0 %vm645_vm7, %v1343_v14  ;;  %2778 = vmatmul.mubr.msk.f32.vlgmr.msra.gmra.mrb[16].mxu1 %vm645_vm7, %v1345_v12  ;;  %v172_v12 = vld [vmem:[%s3499_s3 + $0x50] sm:$0xff] }
 0x707   :  { %2781 = vmatpush3.msra.mxu0 %v1503_v16  ;;  %2785 = vmatprep.subr.mxu1 %v3020_v11  ;;  %v173_v14 = vld [vmem:[%s3499_s3 + $0x70] sm:$0xff] }
 0x708   :  { %2787 = vmatprep.mubr.msk.f32.mxu1 %vm3021_vm5, %v3020_v11  ;;  %2782 = vmatprep.mubr.msk.f32.mxu0 %vm3021_vm5, %v3020_v11  ;;  %v2907_v15 = vpack.c.bf16 %v173_v14, %v172_v12 }
 0x709   :  { %2896 = vmatprep.subr.bf16.mxu0 %v2895_v46 }
 0x70b   :  { %v2990_v21 = vpop.eup %2989 }
 0x70c   :  { %v1349_v22 = vmul.f32 %v2990_v21, %v2982_v61 }
 0x72d   :  { %v1338_v17 = vpop.xlane.xlu1 %1337 }
 0x72e   :  { %2991 = vrcp.f32 %v1338_v17 }
 0x731   :  { %v1579_v25 = vpop.permute.xlu1 %1578 }
 0x732   :  { %2786 = vmatpush3.msra.mxu1 %v1579_v25 }
 0x733   :  { %2788 = vmatmul.mubr.msk.f32.vlgmr.msra.gmra.mrb[18].mxu1 %vm645_vm7, %v1349_v22  ;;  %2904 = vmatprep.subr.bf16.mxu1 %v2903_v10 }
 0x734   :  { %2906 = vmatpush3.bf16.msra.mxu1 %v2903_v10 }
 0x735   :  { %2908 = vmatprep.subr.bf16.mxu1 %v2907_v15 }
 0x738   :  { %v2992_v26 = vpop.eup %2991  ;;  %2910 = vmatpush3.bf16.msra.mxu1 %v2907_v15 }
 0x739   :  { %v1347_v27 = vmul.f32 %v2992_v26, %v2984_v1 }
 0x73b   :  { %2783 = vmatmul.mubr.msk.f32.vlgmr.msra.gmra.mrb[18].mxu0 %vm645_vm7, %v1347_v27 }
 0x73c   :  { %2898 = vmatpush3.bf16.msra.mxu0 %v2895_v46 }
 0x73d   :  { %2900 = vmatprep.subr.bf16.mxu0 %v2899_v30 }
 0x7d9   :  { %v1422_v31 = vpop.f32.mrb[16].mxu0  ;;  %v1498_v33 = vpop.f32.mrb[16].mxu1 }
 0x7da   :  { %v2774_v35 = vpop.f32.mrb[17].mxu0  ;;  %v2779_v36 = vpop.f32.mrb[17].mxu1  ;;  %2794 = vmatprep.mubr.msk.f32.mxu0 %vm339_vm6, %v1422_v31 }
 0x7db   :  { %2795 = vmatmul.mubr.msk.f32.vlgmr.msra.gmra.mrb[20].mxu0 %vm339_vm6, %v1498_v33  ;;  %v2564_v35 = vld [vmem:[%s3500_s5 + $0x2] ss:$0 sm:$0xff] }
 0x7dc   :  { %2902 = vmatpush3.bf16.msra.mxu0 %v2899_v30 }
 0x806   :  { %v1650_v38 = vpop.f32.mrb[18].mxu1 }
 0x807   :  { %v2789_v40 = vpop.f32.mrb[19].mxu1 }
 0x80e   :  { %v1574_v41 = vpop.f32.mrb[18].mxu0 }
 0x80f   :  { %v2784_v43 = vpop.f32.mrb[19].mxu0  ;;  %2797 = vmatprep.mubr.msk.f32.mxu0 %vm339_vm6, %v1574_v41  ;;  %v2565_v41 = vld [vmem:[%s3500_s5 + $0x3] ss:$0 sm:$0xff] }
 0x810   :  { %2798 = vmatmul.mubr.msk.f32.gmra.mrb[22].mxu0 %vm339_vm6, %v1650_v38 }
 0x811   :  { %2804 = vmatprep.mubr.msk.f32.mxu0 %vm339_vm6, %v3275_v20 }
 0x814   :  { %2805 = vmatmul.mubr.msk.f32.vlgmr.msra.gmra.mrb[20].mxu0 %vm339_vm6, %v3273_v18 }
 0x815   :  { %2807 = vmatprep.mubr.msk.f32.mxu0 %vm339_vm6, %v3279_v24 }
 0x818   :  { %2808 = vmatmul.mubr.msk.f32.gmra.mrb[22].mxu0 %vm339_vm6, %v3277_v23 }
 0x819   :  { %2854 = vmatprep.mubr.msk.f32.mxu0 %vm3021_vm5, %v3020_v11 }
 0x8e7   :  { %v2806_v47 = vpop.f32.mrb[20].mxu0 }
 0x8e8   :  { %v1853_v4 = vadd.f32 %v2806_v47, %v2563_v45  ;;  %v1829_v6 = vpop.f32.mrb[21].mxu0 }
 0x8e9   :  { %v1852_v20 = vadd.f32 %v2563_v45, %v1829_v6 }
 0x8ea   :  { %v1857_v49 = vadd.f32 %v1853_v4, %v3127_v34 }
 0x8eb   :  { %v2809_v18 = vpop.f32.mrb[22].mxu0  ;;  %v1856_v50 = vadd.f32 %v1852_v20, %v3122_v32 }
 0x8ec   :  { %v1839_v24 = vpop.f32.mrb[23].mxu0  ;;  %v1863_v51 = vsel %vm64_vm0, %v1857_v49, 0.0  ;;  %v1855_v23 = vadd.f32 %v2809_v18, %v2563_v45 }
 0x8ed   :  { %v1854_v52 = vadd.f32 %v2563_v45, %v1839_v24  ;;  %1864 = vadd.xlane.f32.xlu1 %v1863_v51  ;;  %v1860_v53 = vsel %vm64_vm0, %v1856_v50, 0.0 }
 0x8ee   :  { %1861 = vadd.xlane.f32.xlu0 %v1860_v53  ;;  %v1859_v13 = vadd.f32 %v1855_v23, %v3134_v37  ;;  %v2067_v53 = vld [vmem:[%s3502_s4 + $0x8] sm:$0xff] }
 0x8ef   :  { %v1858_v54 = vadd.f32 %v1854_v52, %v3138_v39  ;;  %v2066_v52 = vld [vmem:[%s3502_s4] sm:$0xff] }
 0x8f0   :  { %v1869_v34 = vsel %vm64_vm0, %v1859_v13, 0.0 }
 0x8f1   :  { %v1866_v19 = vsel %vm64_vm0, %v1858_v54, 0.0 }
 0x8f2   :  { %1867 = vadd.xlane.f32.xlu0 %v1866_v19  ;;  %v2068_v19 = vld [vmem:[%s3502_s4 + $0x10] sm:$0xff] }
 0x8f6   :  { %1870 = vadd.xlane.f32.xlu0 %v1869_v34 }
 0x97a   :  { %v1865_v32 = vpop.xlane.xlu1 %1864 }
 0x97b   :  { %v1874_v55 = vmul.f32 0.03125, %v1865_v32  ;;  %v1862_v56 = vpop.xlane.xlu0 %1861  ;;  %v2070_v32 = vld [vmem:[%s3502_s4 + $0x20] sm:$0xff] }
 0x97c   :  { %v1873_v57 = vmul.f32 0.03125, %v1862_v56 }
 0x97d   :  { %v1878_v58 = vsub.f32 %v1857_v49, %v1874_v55  ;;  %v2071_v55 = vld [vmem:[%s3502_s4 + $0x28] sm:$0xff] }
 0x97e   :  { %v1877_v59 = vsub.f32 %v1856_v50, %v1873_v57  ;;  %v2919_v56 = vpack.c.bf16 %v2071_v55, %v2070_v32  ;;  %v2072_v57 = vld [vmem:[%s3502_s4 + $0x30] sm:$0xff] }
 0x97f   :  { %v1868_v44 = vpop.xlane.xlu0 %1867  ;;  %v1882_v60 = vmul.f32 %v1878_v58, %v1878_v58 }
 0x980   :  { %v1875_v61 = vmul.f32 0.03125, %v1868_v44  ;;  %v1881_v62 = vmul.f32 %v1877_v59, %v1877_v59  ;;  %v2566_v44 = vld [vmem:[%s3500_s5 + $0x4] ss:$0 sm:$0xff] }
 0x981   :  { %v1888_v39 = vsel %vm64_vm0, %v1882_v60, 0.0 }
 0x982   :  { %v1879_v63 = vsub.f32 %v1858_v54, %v1875_v61  ;;  %1889 = vadd.xlane.f32.xlu0 %v1888_v39  ;;  %v1885_v37 = vsel %vm64_vm0, %v1881_v62, 0.0  ;;  %v2911_v54 = vpack.c.bf16 %v2067_v53, %v2066_v52  ;;  %v2575_v52 = vld [vmem:[%s3500_s5 + $0x5] ss:$0 sm:$0xff] }
 0x983   :  { %1886 = vadd.xlane.f32.xlu1 %v1885_v37  ;;  %v1871_v0 = vpop.xlane.xlu0 %1870 }
 0x984   :  { %v1876_v1 = vmul.f32 0.03125, %v1871_v0  ;;  %v1883_v3 = vmul.f32 %v1879_v63, %v1879_v63  ;;  %2912 = vmatprep.subr.bf16.mxu1 %v2911_v54 }
 0x986   :  { %v1880_v5 = vsub.f32 %v1859_v13, %v1876_v1  ;;  %v1891_v7 = vsel %vm64_vm0, %v1883_v3, 0.0  ;;  %v2069_v13 = vld [vmem:[%s3502_s4 + $0x18] sm:$0xff] }
 0x987   :  { %1892 = vadd.xlane.f32.xlu1 %v1891_v7  ;;  %v2915_v34 = vpack.c.bf16 %v2069_v13, %v2068_v19 }
 0x988   :  { %v1884_v8 = vmul.f32 %v1880_v5, %v1880_v5 }
 0x98a   :  { %v1894_v9 = vsel %vm64_vm0, %v1884_v8, 0.0 }
 0x98b   :  { %1895 = vadd.xlane.f32.xlu0 %v1894_v9 }
 0xa0f   :  { %v1890_v46 = vpop.xlane.xlu0 %1889 }
 0xa10   :  { %v1898_v16 = vmul.f32 0.03125, %v1890_v46  ;;  %v1887_v17 = vpop.xlane.xlu1 %1886 }
 0xa11   :  { %v1897_v21 = vmul.f32 0.03125, %v1887_v17 }
 0xa12   :  { %v1902_v22 = vadd.f32 1e-12, %v1898_v16 }
 0xa13   :  { %v1901_v25 = vadd.f32 1e-12, %v1897_v21 }
 0xa14   :  { %2993 = vrsqrt.f32 %v1902_v22  ;;  %v1893_v26 = vpop.xlane.xlu1 %1892 }
 0xa15   :  { %2995 = vrsqrt.f32 %v1901_v25  ;;  %v1899_v27 = vmul.f32 0.03125, %v1893_v26 }
 0xa17   :  { %v1903_v28 = vadd.f32 1e-12, %v1899_v27 }
 0xa18   :  { %v1896_v29 = vpop.xlane.xlu0 %1895 }
 0xa19   :  { %2997 = vrsqrt.f32 %v1903_v28  ;;  %v1900_v30 = vmul.f32 0.03125, %v1896_v29 }
 0xa1b   :  { %v1904_v31 = vadd.f32 1e-12, %v1900_v30 }
 0xa1d   :  { %2999 = vrsqrt.f32 %v1904_v31 }
 0xa1e   :  { %v2994_v33 = vpop.eup %2993 }
 0xa1f   :  { %v2996_v36 = vpop.eup %2995  ;;  %v1910_v38 = vmul.f32 %v2994_v33, %v1878_v58  ;;  %v2073_v58 = vld [vmem:[%s3502_s4 + $0x38] sm:$0xff] }
 0xa20   :  { %v1909_v40 = vmul.f32 %v2996_v36, %v1877_v59  ;;  %v2923_v59 = vpack.c.bf16 %v2073_v58, %v2072_v57 }
 0xa21   :  { %v1918_v43 = vmul.f32 %v2564_v35, %v1910_v38 }
 0xa22   :  { %v1917_v45 = vmul.f32 %v2564_v35, %v1909_v40 }
 0xa23   :  { %v2998_v47 = vpop.eup %2997  ;;  %v3372_v20 = vadd.f32 %v2565_v41, %v1918_v43 }
 0xa24   :  { %v3370_v4 = vadd.f32 %v2565_v41, %v1917_v45  ;;  %v1911_v6 = vmul.f32 %v2998_v47, %v1879_v63 }
 0xa26   :  { %2818 = vmatprep.mubr.msk.f32.mxu1 %vm64_vm0, %v3370_v4  ;;  %v1919_v49 = vmul.f32 %v2564_v35, %v1911_v6 }
 0xa27   :  { %v3000_v18 = vpop.eup %2999  ;;  %2819 = vmatmul.mubr.msk.f32.vlgmr.msra.gmra.mrb[20].mxu1 %vm64_vm0, %v3372_v20 }
 0xa28   :  { %v3378_v50 = vadd.f32 %v2565_v41, %v1919_v49  ;;  %v1912_v24 = vmul.f32 %v3000_v18, %v1880_v5  ;;  %2914 = vmatpush3.bf16.msra.mxu1 %v2911_v54 }
 0xa29   :  { %2916 = vmatprep.subr.bf16.mxu1 %v2915_v34 }
 0xa2a   :  { %2821 = vmatprep.mubr.msk.f32.mxu1 %vm64_vm0, %v3378_v50  ;;  %v1920_v51 = vmul.f32 %v2564_v35, %v1912_v24 }
 0xa2c   :  { %v3382_v23 = vadd.f32 %v2565_v41, %v1920_v51  ;;  %2918 = vmatpush3.bf16.msra.mxu1 %v2915_v34 }
 0xa2d   :  { %2920 = vmatprep.subr.bf16.mxu1 %v2919_v56 }
 0xa2e   :  { %2822 = vmatmul.mubr.msk.f32.gmra.mrb[22].mxu1 %vm64_vm0, %v3382_v23 }
 0xa30   :  { %2922 = vmatpush3.bf16.msra.mxu1 %v2919_v56 }
 0xa31   :  { %2924 = vmatprep.subr.bf16.mxu1 %v2923_v59 }
 0xa34   :  { %2926 = vmatpush3.bf16.msra.mxu1 %v2923_v59 }
 0xafa   :  { %v2820_v60 = vpop.f32.mrb[20].mxu1 }
 0xafb   :  { %v2017_v61 = vadd.f32 %v2820_v60, %v2566_v44  ;;  %v2011_v62 = vpop.f32.mrb[21].mxu1 }
 0xafc   :  { %v2012_v39 = vadd.f32 %v2566_v44, %v2011_v62 }
 0xafd   :  { %v2031_v63 = vmul.f32 %v2017_v61, %v2017_v61 }
 0xafe   :  { %v2030_v37 = vmul.f32 %v2012_v39, %v2012_v39 }
 0xaff   :  { %v2035_v0 = vmul.f32 %v2031_v63, %v2017_v61 }
 0xb00   :  { %v2034_v1 = vmul.f32 %v2030_v37, %v2012_v39 }
 0xb01   :  { %v2039_v3 = vmul.f32 0.044715, %v2035_v0  ;;  %v2823_v5 = vpop.f32.mrb[22].mxu1 }
 0xb02   :  { %v2038_v7 = vmul.f32 0.044715, %v2034_v1  ;;  %v2027_v8 = vadd.f32 %v2823_v5, %v2566_v44  ;;  %v2021_v9 = vpop.f32.mrb[23].mxu1 }
 0xb03   :  { %v2043_v42 = vadd.f32 %v2039_v3, %v2017_v61  ;;  %v2022_v48 = vadd.f32 %v2566_v44, %v2021_v9 }
 0xb04   :  { %v2042_v10 = vadd.f32 %v2038_v7, %v2012_v39  ;;  %v2033_v12 = vmul.f32 %v2027_v8, %v2027_v8 }
 0xb05   :  { %v2047_v14 = vmul.f32 0.7978846, %v2043_v42  ;;  %v2032_v15 = vmul.f32 %v2022_v48, %v2022_v48 }
 0xb06   :  { %v2046_v46 = vmul.f32 0.7978846, %v2042_v10  ;;  %v2037_v16 = vmul.f32 %v2033_v12, %v2027_v8 }
 0xb07   :  { %3001 = vtanh.f32 %v2047_v14  ;;  %v2036_v17 = vmul.f32 %v2032_v15, %v2022_v48 }
 0xb08   :  { %3003 = vtanh.f32 %v2046_v46  ;;  %v2041_v21 = vmul.f32 0.044715, %v2037_v16  ;;  %v174_v46 = vld [vmem:[%s3499_s3 + $0x18] sm:$0xff] }
 0xb09   :  { %v2040_v22 = vmul.f32 0.044715, %v2036_v17  ;;  %v175_v16 = vld [vmem:[%s3499_s3 + $0x38] sm:$0xff] }
 0xb0a   :  { %v2045_v25 = vadd.f32 %v2041_v21, %v2027_v8  ;;  %v2928_v17 = vpack.c.bf16 %v175_v16, %v174_v46  ;;  %v3028_v21 = vmov 0.0|0.0  }
 0xb0b   :  { %v2044_v26 = vadd.f32 %v2040_v22, %v2022_v48  ;;  %2927 = vmatprep.subr.bf16.mxu0 %v3028_v21  ;;  %v176_v22 = vld [vmem:[%s3499_s3 + $0x58] sm:$0xff]  ;;  %2939 = vmatprep.subr.bf16.mxu1 %v3028_v21 }
 0xb0c   :  { %v2049_v27 = vmul.f32 0.7978846, %v2045_v25  ;;  %v177_v25 = vld [vmem:[%s3499_s3 + $0x78] sm:$0xff]  ;;  %2929 = vmatpush3.bf16.msra.mxu0 %v2928_v17 }
 0xb0d   :  { %v2048_v28 = vmul.f32 0.7978846, %v2044_v26  ;;  %v2931_v26 = vpack.c.bf16 %v177_v25, %v176_v22  ;;  %2930 = vmatprep.subr.bf16.mxu0 %v3028_v21 }
 0xb0e   :  { %3005 = vtanh.f32 %v2049_v27 }
 0xb0f   :  { %3007 = vtanh.f32 %v2048_v28 }
 0xb10   :  { %2932 = vmatpush3.bf16.msra.mxu0 %v2931_v26 }
 0xb11   :  { %v3002_v29 = vpop.eup %3001  ;;  %2933 = vmatprep.subr.bf16.mxu0 %v3028_v21 }
 0xb12   :  { %v3004_v30 = vpop.eup %3003  ;;  %v2055_v31 = vadd.f32 1.0, %v3002_v29 }
 0xb13   :  { %v2054_v33 = vadd.f32 1.0, %v3004_v30 }
 0xb14   :  { %v2059_v35 = vmul.f32 0.5, %v2055_v31 }
 0xb15   :  { %v2058_v36 = vmul.f32 0.5, %v2054_v33 }
 0xb16   :  { %v2063_v41 = vmul.f32 %v2059_v35, %v2017_v61 }
 0xb17   :  { %v2062_v38 = vmul.f32 %v2058_v36, %v2012_v39 }
 0xb18   :  { %v3006_v40 = vpop.eup %3005 }
 0xb19   :  { %v3008_v43 = vpop.eup %3007  ;;  %2840 = vmatprep.mubr.msk.f32.mxu1 %vm2074_vm8, %v2062_v38  ;;  %v2057_v45 = vadd.f32 1.0, %v3006_v40 }
 0xb1a   :  { %2841 = vmatmul.mubr.msk.f32.vlgmr.msra.gmra.mrb[24].mxu1 %vm2074_vm8, %v2063_v41  ;;  %v2056_v47 = vadd.f32 1.0, %v3008_v43 }
 0xb1b   :  { %v2061_v6 = vmul.f32 0.5, %v2057_v45 }
 0xb1c   :  { %v2060_v49 = vmul.f32 0.5, %v2056_v47 }
 0xb1d   :  { %v2065_v24 = vmul.f32 %v2061_v6, %v2027_v8 }
 0xb1e   :  { %v2064_v18 = vmul.f32 %v2060_v49, %v2022_v48  ;;  %v2576_v49 = vld [vmem:[%s3500_s5 + $0x6] ss:$0 sm:$0xff] }
 0xb20   :  { %2843 = vmatprep.mubr.msk.f32.mxu1 %vm2074_vm8, %v2064_v18 }
 0xb21   :  { %2844 = vmatmul.mubr.msk.f32.gmra.mrb[26].mxu1 %vm2074_vm8, %v2065_v24 }
 0xb22   :  { %2876 = vmatprep.mubr.msk.f32.mxu1 %vm3021_vm5, %v3020_v11 }
 0xbed   :  { %v2842_v51 = vpop.f32.mrb[24].mxu1 }
 0xbee   :  { %v2173_v53 = vadd.f32 %v2842_v51, %v3372_v20  ;;  %v2153_v54 = vpop.f32.mrb[25].mxu1 }
 0xbef   :  { %v2172_v19 = vadd.f32 %v2153_v54, %v3370_v4 }
 0xbf0   :  { %v2181_v13 = vadd.f32 %v2575_v52, %v2173_v53  ;;  %v2577_v53 = vld [vmem:[%s3500_s5 + $0x7] ss:$0 sm:$0xff] }
 0xbf1   :  { %v2180_v32 = vadd.f32 %v2575_v52, %v2172_v19 }
 0xbf2   :  { %v2187_v34 = vsel %vm64_vm0, %v2181_v13, 0.0 }
 0xbf3   :  { %2188 = vadd.xlane.f32.xlu1 %v2187_v34  ;;  %v2184_v59 = vsel %vm64_vm0, %v2180_v32, 0.0 }
 0xbf4   :  { %v2845_v55 = vpop.f32.mrb[26].mxu1 }
 0xbf5   :  { %v2163_v56 = vpop.f32.mrb[27].mxu1  ;;  %v2175_v57 = vadd.f32 %v2845_v55, %v3382_v23 }
 0xbf6   :  { %v2174_v58 = vadd.f32 %v2163_v56, %v3378_v50 }
 0xbf7   :  { %2185 = vadd.xlane.f32.xlu1 %v2184_v59  ;;  %v2183_v60 = vadd.f32 %v2575_v52, %v2175_v57 }
 0xbf8   :  { %v2182_v44 = vadd.f32 %v2575_v52, %v2174_v58 }
 0xbf9   :  { %v2193_v4 = vsel %vm64_vm0, %v2183_v60, 0.0 }
 0xbfa   :  { %v2190_v20 = vsel %vm64_vm0, %v2182_v44, 0.0 }
 0xbfb   :  { %2191 = vadd.xlane.f32.xlu0 %v2190_v20 }
 0xbff   :  { %2194 = vadd.xlane.f32.xlu0 %v2193_v4 }
 0xc80   :  { %v2189_v61 = vpop.xlane.xlu1 %2188 }
 0xc81   :  { %v2197_v62 = vmul.f32 0.03125, %v2189_v61 }
 0xc83   :  { %v2201_v39 = vsub.f32 %v2181_v13, %v2197_v62  ;;  %v2342_v62 = vld [vmem:[%s3503_s6] sm:$0xff] }
 0xc84   :  { %v2186_v63 = vpop.xlane.xlu1 %2185 }
 0xc85   :  { %v2196_v37 = vmul.f32 0.03125, %v2186_v63  ;;  %v2205_v0 = vmul.f32 %v2201_v39, %v2201_v39 }
 0xc87   :  { %v2200_v23 = vsub.f32 %v2180_v32, %v2196_v37  ;;  %v2211_v50 = vsel %vm64_vm0, %v2205_v0, 0.0  ;;  %v2580_v37 = vld [vmem:[%s3503_s6 + $0x28] sm:$0xff]  ;;  %v2581_v0 = vld [vmem:[%s3503_s6 + $0x30] sm:$0xff] }
 0xc88   :  { %2212 = vadd.xlane.f32.xlu1 %v2211_v50  ;;  %v2192_v1 = vpop.xlane.xlu0 %2191  ;;  %v2345_v50 = vld [vmem:[%s3503_s6 + $0x18] sm:$0xff] }
 0xc89   :  { %v2198_v3 = vmul.f32 0.03125, %v2192_v1  ;;  %v2204_v5 = vmul.f32 %v2200_v23, %v2200_v23 }
 0xc8b   :  { %v2202_v7 = vsub.f32 %v2182_v44, %v2198_v3  ;;  %v2208_v8 = vsel %vm64_vm0, %v2204_v5, 0.0  ;;  %v2582_v3 = vld [vmem:[%s3503_s6 + $0x38] sm:$0xff]  ;;  %v2583_v5 = vld [vmem:[%s3503_s6 + $0x40] sm:$0xff] }
 0xc8c   :  { %2209 = vadd.xlane.f32.xlu1 %v2208_v8  ;;  %v2195_v9 = vpop.xlane.xlu0 %2194  ;;  %v2578_v8 = vld [vmem:[%s3500_s5 + $0x8] ss:$0 sm:$0xff] }
 0xc8d   :  { %v2199_v42 = vmul.f32 0.03125, %v2195_v9  ;;  %v2206_v48 = vmul.f32 %v2202_v7, %v2202_v7 }
 0xc8f   :  { %v2203_v10 = vsub.f32 %v2183_v60, %v2199_v42  ;;  %v2214_v12 = vsel %vm64_vm0, %v2206_v48, 0.0 }
 0xc90   :  { %2215 = vadd.xlane.f32.xlu0 %v2214_v12 }
 0xc91   :  { %v2207_v14 = vmul.f32 %v2203_v10, %v2203_v10 }
 0xc93   :  { %v2217_v15 = vsel %vm64_vm0, %v2207_v14, 0.0  ;;  %v2584_v14 = vld [vmem:[%s3503_s6 + $0x48] sm:$0xff] }
 0xc94   :  { %2218 = vadd.xlane.f32.xlu0 %v2217_v15  ;;  %v2346_v15 = vld [vmem:[%s3503_s6 + $0x20] sm:$0xff]  ;;  %v2433_v46 = vrot.slane %v2584_v14, %v3197_v2 }
 0xc95   :  { %v2356_v17 = vrot.slane %v2346_v15, %v3197_v2 }
 0xd15   :  { %v2213_v27 = vpop.xlane.xlu1 %2212 }
 0xd16   :  { %v2221_v28 = vmul.f32 0.03125, %v2213_v27 }
 0xd18   :  { %v2225_v29 = vadd.f32 1e-12, %v2221_v28 }
 0xd19   :  { %v2210_v30 = vpop.xlane.xlu1 %2209 }
 0xd1a   :  { %v2220_v31 = vmul.f32 0.03125, %v2210_v30  ;;  %3009 = vrsqrt.f32 %v2225_v29 }
 0xd1c   :  { %v2224_v33 = vadd.f32 1e-12, %v2220_v31 }
 0xd1d   :  { %v2216_v35 = vpop.xlane.xlu0 %2215 }
 0xd1e   :  { %3011 = vrsqrt.f32 %v2224_v33  ;;  %v2222_v36 = vmul.f32 0.03125, %v2216_v35 }
 0xd20   :  { %v2226_v38 = vadd.f32 1e-12, %v2222_v36 }
 0xd21   :  { %v2219_v40 = vpop.xlane.xlu0 %2218 }
 0xd22   :  { %3013 = vrsqrt.f32 %v2226_v38  ;;  %v2223_v41 = vmul.f32 0.03125, %v2219_v40 }
 0xd24   :  { %v2227_v43 = vadd.f32 1e-12, %v2223_v41  ;;  %v3010_v45 = vpop.eup %3009 }
 0xd25   :  { %v2233_v6 = vmul.f32 %v3010_v45, %v2201_v39  ;;  %v2343_v39 = vld [vmem:[%s3503_s6 + $0x8] sm:$0xff] }
 0xd26   :  { %3015 = vrsqrt.f32 %v2227_v43  ;;  %v2934_v63 = vpack.c.bf16 %v2343_v39, %v2342_v62 }
 0xd27   :  { %v2241_v51 = vmul.f32 %v2576_v49, %v2233_v6 }
 0xd28   :  { %v3012_v47 = vpop.eup %3011 }
 0xd29   :  { %v2232_v18 = vmul.f32 %v3012_v47, %v2200_v23  ;;  %v2249_v34 = vadd.f32 %v2577_v53, %v2241_v51  ;;  %v2940_v23 = vpack.c.bf16 %v2581_v0, %v2580_v37 }
 0xd2b   :  { %v2240_v54 = vmul.f32 %v2576_v49, %v2232_v18  ;;  %v2260_v59 = vrot.slane %v2249_v34, 7  ;;  %2941 = vmatpush3.bf16.msra.mxu1 %v2940_v23 }
 0xd2c   :  { %v3014_v24 = vpop.eup %3013  ;;  %2942 = vmatprep.subr.bf16.mxu1 %v3028_v21 }
 0xd2d   :  { %v2234_v52 = vmul.f32 %v3014_v24, %v2202_v7  ;;  %v2248_v56 = vadd.f32 %v2577_v53, %v2240_v54  ;;  %v2943_v7 = vpack.c.bf16 %v2583_v5, %v2582_v3 }
 0xd2f   :  { %v2242_v19 = vmul.f32 %v2576_v49, %v2234_v52  ;;  %v2262_v20 = vsel %vm2261_vm9, %v2260_v59, %v2248_v56  ;;  %2944 = vmatpush3.bf16.msra.mxu1 %v2943_v7 }
 0xd30   :  { %v3016_v13 = vpop.eup %3015 }
 0xd31   :  { %v2235_v32 = vmul.f32 %v3016_v13, %v2203_v10  ;;  %v2250_v55 = vadd.f32 %v2577_v53, %v2242_v19 }
 0xd33   :  { %v2243_v57 = vmul.f32 %v2576_v49, %v2235_v32  ;;  %v2263_v58 = vrot.slane %v2250_v55, 6 }
 0xd35   :  { %v2251_v44 = vadd.f32 %v2577_v53, %v2243_v57  ;;  %v2265_v4 = vsel %vm2264_vm10, %v2263_v58, %v2262_v20 }
 0xd37   :  { %v2266_v60 = vrot.slane %v2251_v44, 5 }
 0xd39   :  { %v2268_v61 = vsel %vm2267_vm11, %v2266_v60, %v2265_v4 }
 0xd3a   :  { %2855 = vmatmul.mubr.msk.f32.vlgmr.msra.gmra.mrb[24].mxu0 %vm64_vm0, %v2268_v61 }
 0xd3b   :  { %2865 = vmatprep.mubr.msk.f32.mxu0 %vm3021_vm5, %v3020_v11  ;;  %2935 = vmatpush3.bf16.msra.mxu0 %v2934_v63  ;;  %v2344_v11 = vld [vmem:[%s3503_s6 + $0x10] sm:$0xff] }
 0xd3c   :  { %2936 = vmatprep.subr.bf16.mxu0 %v3028_v21  ;;  %v2937_v1 = vpack.c.bf16 %v2345_v50, %v2344_v11 }
 0xd3f   :  { %2938 = vmatpush3.bf16.msra.mxu0 %v2937_v1 }
 0xe0d   :  { %v2337_v9 = vpop.f32.mrb[24].mxu0 }
 0xe0e   :  { %v2338_v42 = vadd.f32 %v2578_v8, %v2337_v9  ;;  %v2856_v48 = vpop.f32.mrb[25].mxu0 }
 0xe10   :  { %3017 = vtanh.f32 %v2338_v42 }
 0xe1a   :  { %v3018_v10 = vpop.eup %3017 }
 0xe1b   :  { %v2434_v12 = vrot.slane %v3018_v10, 2  ;;  %2866 = vmatmul.mubr.msk.f32.vlgmr.msra.gmra.mrb[26].mxu0 %vm64_vm0, %v3018_v10 }
 0xe1d   :  { %2877 = vmatmul.mubr.msk.f32.vlgmr.msra.gmra.mrb[28].mxu1 %vm64_vm0, %v2434_v12 }
 0xeee   :  { %v2426_v16 = vpop.f32.mrb[26].mxu0 }
 0xeef   :  { %v2867_v21 = vpop.f32.mrb[27].mxu0  ;;  %v2427_v27 = vadd.f32 %v2426_v16, %v2356_v17 }
 0xef0   :  { %v2503_v22 = vpop.f32.mrb[28].mxu1 }
 0xef1   :  { %v2504_v25 = vadd.f32 %v2503_v22, %v2433_v46  ;;  %v2878_v26 = vpop.f32.mrb[29].mxu1 }
 0xef3   :  { %v2508_v28 = vrot.slane %v2504_v25, 6 }
 0xef5   :  { %v2511_v29 = vsel %vm2510_vm12, %v2427_v27, %v2508_v28 }
 0xef6   :  { %2512 = vst [vmem:[%s3504_s7] sm:$0xf] %v2511_v29 }

</bundles_post_ra>
